<compile_context>
chip_gen: v6e
topology: v6e:2x2x1
jax: 0.10.0
libtpu: 0.0.40
codegen_flags: <defaults>
</compile_context>

<pallas_src>
import numpy as np
import jax
import jax.numpy as jnp
from jax import lax
from jax.experimental import pallas as pl
from jax.experimental.pallas import tpu as pltpu

_SQRT_2 = 1.4142135623730951


def _erf_approx(x):
    # Abramowitz & Stegun 7.1.26 polynomial erf (max abs err ~1.5e-7); the
    # divide uses the EUP approximate reciprocal (free co-issue slot).
    a1, a2, a3, a4, a5 = 0.254829592, -0.284496736, 1.421413741, -1.453152027, 1.061405429
    p = 0.3275911
    sgn = jnp.where(x >= 0.0, 1.0, -1.0)
    ax = jnp.abs(x)
    t = pl.reciprocal(1.0 + p * ax, approx=True)
    poly = ((((a5 * t + a4) * t + a3) * t + a2) * t + a1) * t
    return sgn * (1.0 - poly * jnp.exp(-ax * ax))


def _gelu_exact(x):
    return 0.5 * x * (1.0 + _erf_approx(x / _SQRT_2))


# ------------------------------ fused kernel -------------------------------- #
def _drfd_fused_kernel(xpe_ref, xpo_ref, a_ref, cx_ref, sel_ref, lsh_ref,
                       gco_ref, gce_ref, bdfx_ref, bdfm_ref,
                       b1_ref, bx_ref, bf_ref, out_ref):
    # xpe/xpo : (1, H2+1, (W+2)*Cin)  even / odd rows of the zero-padded input
    # a       : (3, (W+2)*Cin, (W+2)*Cout)  stage-1 per-ky lane matrices
    # cx      : (3, (W+2)*Cout, W2*Cout)    depthwise stride-2 per-ky lane matrices
    # sel     : (2, (W+2)*Cout, W2*Cout)    maxpool 0/1 column selections
    # lsh     : (H2, H2)                    shift-down-one-row matrix (top row = pad)
    # gco/gce : ((W+2)*Cin, W2*Cout)        Cut conv + BN_c + fusion c-slab, folded
    # bdfx/bdfm : (W2*Cout, W2*Cout)        BN_x / BN_m + fusion slabs, block diagonal
    # b1/bx/bf  : lane-dense bias rows
    H2 = out_ref.shape[1]

    def dot(a, b):
        return jnp.dot(a, b, preferred_element_type=jnp.float32)

    xpe = xpe_ref[0]                       # (H2+1, (W+2)*Cin)
    xpo = xpo_ref[0]
    xpe_lo, xpe_hi = xpe[:H2], xpe[1:H2 + 1]
    xpo_lo, xpo_hi = xpo[:H2], xpo[1:H2 + 1]

    # --- stage 1: grouped 3x3 stride-1 conv -> row-parity halves of m ------------
    # Each half is a lane-dense (H2, (W+2)*Cout) slab whose W-pad lanes are zero
    # because the corresponding columns of A[ky] (and of b1) are zero.
    b1 = b1_ref[...]
    m_even = b1 + dot(xpe_lo, a_ref[0]) + dot(xpo_lo, a_ref[1]) + dot(xpe_hi, a_ref[2])
    m_odd = b1 + dot(xpo_lo, a_ref[0]) + dot(xpe_hi, a_ref[1]) + dot(xpo_hi, a_ref[2])

    # --- x branch: depthwise 3x3 stride-2 conv (stride + kx taps folded into Cx),
    #     top pad row handled by the lsh shift, then exact GELU --------------------
    xc = (bx_ref[...] + dot(m_even, cx_ref[1]) + dot(m_odd, cx_ref[2])
          + dot(lsh_ref[...], dot(m_odd, cx_ref[0])))
    xg = _gelu_exact(xc)                                    # (H2, W2*Cout)

    # --- m branch: 2x2 stride-2 max pool (column picks via exact 0/1 matmuls) ----
    rmax = jnp.maximum(m_even, m_odd)
    mm = jnp.maximum(dot(rmax, sel_ref[0]), dot(rmax, sel_ref[1]))

    # --- Cut branch + fusion 1x1 conv (Cut conv, BN_c/x/m, fusion all pre-folded) -
    out = (bf_ref[...]
           + dot(xpo_lo, gco_ref[...]) + dot(xpe_hi, gce_ref[...])
           + dot(xg, bdfx_ref[...]) + dot(mm, bdfm_ref[...]))
    out_ref[0] = out                                        # lane-dense store


# ------------------------------- wrapper ------------------------------------ #
def drfd_forward(x_nchw, params):
    eps = 1e-5
    f32 = jnp.float32
    N, Cin, H, W = x_nchw.shape
    Cout = params["conv_w"].shape[0]
    H2, W2 = H // 2, W // 2
    Wp = W + 2
    cpg = Cout // Cin                     # output channels per group

    # ----- per-pixel tensors sent to the kernel: just the padded-input row parities
    x = jnp.transpose(x_nchw, (0, 2, 3, 1)).astype(f32)          # NHWC
    xpad = jnp.pad(x, ((0, 0), (1, 1), (1, 1), (0, 0)))
    xpad_f = xpad.reshape(N, H + 2, Wp * Cin)
    xpe = xpad_f[:, 0::2, :]                                     # (N, H2+1, Wp*Cin)
    xpo = xpad_f[:, 1::2, :]

    # ----- static 0/1 structure matrices (numpy, host) -----
    Sw = np.zeros((3, Wp, Wp), np.float32)       # xpad col (w+kx) -> m-pad col (w+1)
    for kx in range(3):
        Sw[kx, kx:kx + W, 1:1 + W] = np.eye(W, dtype=np.float32)
    Pw = np.zeros((3, Wp, W2), np.float32)       # m-pad col (2j+kx) -> out col j
    Msel = np.zeros((2, Wp, W2), np.float32)     # padded col (2j+1+dx) -> out col j
    for j in range(W2):
        for kx in range(3):
            Pw[kx, 2 * j + kx, j] = 1.0
        for dx in range(2):
            Msel[dx, 2 * j + 1 + dx, j] = 1.0
    lsh = np.eye(H2, k=-1, dtype=np.float32)     # shift rows down by one (row 0 = pad)

    # ----- stage-1 grouped conv folded into 3 lane matrices (group expansion too) --
    w1_taps = jnp.transpose(params["conv_w"][:, 0], (1, 2, 0))   # (3, 3, Cout)
    expand = (jnp.arange(Cin)[:, None] == (jnp.arange(Cout) // cpg)[None, :]).astype(f32)
    A = jnp.stack([
        sum(jnp.kron(jnp.asarray(Sw[kx]), expand * w1_taps[ky, kx][None, :])
            for kx in range(3))
        for ky in range(3)])                                     # (3, Wp*Cin, Wp*Cout)
    b1p = (jnp.zeros((Wp, Cout), f32)
           .at[1:1 + W, :].set(params["conv_b"][None, :])
           .reshape(1, Wp * Cout))                               # zero on W-pad lanes

    # ----- depthwise 3x3 stride-2 conv folded into 3 lane matrices -----
    wx_taps = jnp.transpose(params["convx_w"][:, 0], (1, 2, 0))  # (3, 3, Cout)
    Cx = jnp.stack([
        sum(jnp.kron(jnp.asarray(Pw[kx]), jnp.diag(wx_taps[ky, kx])) for kx in range(3))
        for ky in range(3)])                                     # (3, Wp*Cout, W2*Cout)
    bx_row = jnp.tile(params["convx_b"], W2).reshape(1, W2 * Cout)

    # ----- 2x2 max-pool column selections (exact 0/1 picks) -----
    Sel = jnp.stack([jnp.kron(jnp.asarray(Msel[dx]), jnp.eye(Cout, dtype=f32))
                     for dx in range(2)])                        # (2, Wp*Cout, W2*Cout)

    # ----- fold eval-mode BatchNorms, Cut conv and the fusion 1x1 conv -----
    def bn_fold(bn):
        g, b, mu, var = bn
        s = g / jnp.sqrt(var + eps)
        return s, b - mu * s

    sc, tc = bn_fold(params["bn_c"])
    sx, tx = bn_fold(params["bn_x"])
    sm, tm_ = bn_fold(params["bn_m"])

    wf = params["fuse_w"][:, :, 0, 0].T                          # (3*Cout, Cout)
    wf_c, wf_x, wf_m = wf[:Cout], wf[Cout:2 * Cout], wf[2 * Cout:]
    wcut = params["cut_w"][:, :, 0, 0].T                         # (4*Cin, Cout)
    wc_eff = (wcut * sc[None, :]) @ wf_c                         # Cut conv+BN_c+fusion
    wfx_eff = sx[:, None] * wf_x                                 # BN_x folded
    wfm_eff = sm[:, None] * wf_m                                 # BN_m folded
    bf_vec = (params["fuse_b"] + (params["cut_b"] * sc + tc) @ wf_c
              + tx @ wf_x + tm_ @ wf_m)
    bf_row = jnp.tile(bf_vec, W2).reshape(1, W2 * Cout)

    # Cut branch reads its four space-to-depth picks straight out of the same
    # xpo/xpe row slabs already loaded for stage 1 (0/1 column selection folded
    # into wc_eff -> two matrices, one per row parity).
    gc_o = (jnp.kron(jnp.asarray(Msel[0]), wc_eff[0 * Cin:1 * Cin])
            + jnp.kron(jnp.asarray(Msel[1]), wc_eff[2 * Cin:3 * Cin]))
    gc_e = (jnp.kron(jnp.asarray(Msel[0]), wc_eff[1 * Cin:2 * Cin])
            + jnp.kron(jnp.asarray(Msel[1]), wc_eff[3 * Cin:4 * Cin]))

    eye_w2 = jnp.eye(W2, dtype=f32)
    bdfx = jnp.kron(eye_w2, wfx_eff)                             # (W2*Cout, W2*Cout)
    bdfm = jnp.kron(eye_w2, wfm_eff)

    phase_spec = pl.BlockSpec((1, H2 + 1, Wp * Cin), lambda n: (n, 0, 0))

    def const2d(shape):
        return pl.BlockSpec(shape, lambda n: (0, 0))

    def const3d(shape):
        return pl.BlockSpec(shape, lambda n: (0, 0, 0))

    out2d = pl.pallas_call(
        _drfd_fused_kernel,
        out_shape=jax.ShapeDtypeStruct((N, H2, W2 * Cout), f32),
        grid=(N,),
        in_specs=[
            phase_spec, phase_spec,
            const3d((3, Wp * Cin, Wp * Cout)),
            const3d((3, Wp * Cout, W2 * Cout)),
            const3d((2, Wp * Cout, W2 * Cout)),
            const2d((H2, H2)),
            const2d((Wp * Cin, W2 * Cout)),
            const2d((Wp * Cin, W2 * Cout)),
            const2d((W2 * Cout, W2 * Cout)),
            const2d((W2 * Cout, W2 * Cout)),
            const2d((1, Wp * Cout)),
            const2d((1, W2 * Cout)),
            const2d((1, W2 * Cout)),
        ],
        out_specs=pl.BlockSpec((1, H2, W2 * Cout), lambda n: (n, 0, 0)),
        compiler_params=pltpu.CompilerParams(dimension_semantics=("parallel",)),
    )(xpe, xpo, A, Cx, Sel, jnp.asarray(lsh), gc_o, gc_e, bdfx, bdfm,
      b1p, bx_row, bf_row)

    out_nhwc = out2d.reshape(N, H2, W2, Cout)
    return jnp.transpose(out_nhwc, (0, 3, 1, 2))                 # back to NCHW


# --------------------------- pure-JAX reference ------------------------------ #
def drfd_reference(x_nchw, params):
    eps = 1e-5
    P = jax.lax.Precision.HIGHEST

    def conv(x, w, b, stride, pad, groups):
        y = lax.conv_general_dilated(
            x, w, window_strides=(stride, stride),
            padding=[(pad, pad), (pad, pad)],
            dimension_numbers=("NCHW", "OIHW", "NCHW"),
            feature_group_count=groups, precision=P)
        return y + b[None, :, None, None]

    def bn(x, bnp):
        g, b, mu, var = bnp
        return ((x - mu[None, :, None, None])
                / jnp.sqrt(var + eps)[None, :, None, None]
                * g[None, :, None, None] + b[None, :, None, None])

    Cin = x_nchw.shape[1]
    c = x_nchw
    x = conv(x_nchw, params["conv_w"], params["conv_b"], 1, 1, Cin)
    mm = x
    x0 = c[:, :, 0::2, 0::2]; x1 = c[:, :, 1::2, 0::2]
    x2 = c[:, :, 0::2, 1::2]; x3 = c[:, :, 1::2, 1::2]
    cc = jnp.concatenate([x0, x1, x2, x3], axis=1)
    cc = conv(cc, params["cut_w"], params["cut_b"], 1, 0, 1)
    cc = bn(cc, params["bn_c"])
    Cout = params["conv_w"].shape[0]
    xb = conv(x, params["convx_w"], params["convx_b"], 2, 1, Cout)
    xb = jax.nn.gelu(xb, approximate=False)
    xb = bn(xb, params["bn_x"])
    mb = lax.reduce_window(mm, -jnp.inf, lax.max, (1, 1, 2, 2), (1, 1, 2, 2), "VALID")
    mb = bn(mb, params["bn_m"])
    y = jnp.concatenate([cc, xb, mb], axis=1)
    y = conv(y, params["fuse_w"], params["fuse_b"], 1, 0, 1)
    return y


if __name__ == "__main__":
    N, Cin, Cout, H, W = 2, 4, 16, 16, 16

    key = jax.random.PRNGKey(0)
    kx, kp = jax.random.split(key)
    x = jax.random.normal(kx, (N, Cin, H, W), jnp.float32)

    ks = jax.random.split(kp, 24)

    def rnd(k, shape, scale):
        return scale * jax.random.normal(k, shape, jnp.float32)

    def bn_params(k0, k1, k2, k3):
        return (1.0 + 0.1 * jax.random.normal(k0, (Cout,), jnp.float32),    # gamma
                rnd(k1, (Cout,), 0.1),                                      # beta
                rnd(k2, (Cout,), 0.1),                                      # running_mean
                0.5 + jnp.abs(jax.random.normal(k3, (Cout,), jnp.float32)))  # running_var

    params = {
        "conv_w": rnd(ks[0], (Cout, 1, 3, 3), 0.3),          # grouped conv, groups=Cin
        "conv_b": rnd(ks[1], (Cout,), 0.1),
        "convx_w": rnd(ks[2], (Cout, 1, 3, 3), 0.3),         # depthwise conv, groups=Cout
        "convx_b": rnd(ks[3], (Cout,), 0.1),
        "cut_w": rnd(ks[4], (Cout, 4 * Cin, 1, 1), 0.2),     # Cut 1x1 conv
        "cut_b": rnd(ks[5], (Cout,), 0.1),
        "fuse_w": rnd(ks[6], (Cout, 3 * Cout, 1, 1), 0.15),  # fusion 1x1 conv
        "fuse_b": rnd(ks[7], (Cout,), 0.1),
        "bn_c": bn_params(ks[8], ks[9], ks[10], ks[11]),
        "bn_x": bn_params(ks[12], ks[13], ks[14], ks[15]),
        "bn_m": bn_params(ks[16], ks[17], ks[18], ks[19]),
    }

    out = jax.block_until_ready(drfd_forward(x, params))
    ref = jax.block_until_ready(drfd_reference(x, params))
    np.testing.assert_allclose(np.asarray(out), np.asarray(ref), rtol=5e-3, atol=5e-3)
    print("KERNEL_OK")
</pallas_src>

<mosaic_0001>
module attributes {stable_mosaic.version = 11 : i64} {
  func.func @_drfd_fused_kernel(%arg0: i32, %arg1: memref<1x9x72xf32, #tpu.memory_space<vmem>>, %arg2: memref<1x9x72xf32, #tpu.memory_space<vmem>>, %arg3: memref<3x72x288xf32, #tpu.memory_space<vmem>>, %arg4: memref<3x288x128xf32, #tpu.memory_space<vmem>>, %arg5: memref<2x288x128xf32, #tpu.memory_space<vmem>>, %arg6: memref<8x8xf32, #tpu.memory_space<vmem>>, %arg7: memref<72x128xf32, #tpu.memory_space<vmem>>, %arg8: memref<72x128xf32, #tpu.memory_space<vmem>>, %arg9: memref<128x128xf32, #tpu.memory_space<vmem>>, %arg10: memref<128x128xf32, #tpu.memory_space<vmem>>, %arg11: memref<1x288xf32, #tpu.memory_space<vmem>>, %arg12: memref<1x128xf32, #tpu.memory_space<vmem>>, %arg13: memref<1x128xf32, #tpu.memory_space<vmem>>, %arg14: memref<1x8x128xf32, #tpu.memory_space<vmem>>) attributes {dimension_semantics = [#tpu.dimension_semantics<parallel>], iteration_bounds = array<i64: 2>, scalar_prefetch = 0 : i64, scratch_operands = 0 : i64, tpu.core_type = #tpu.core_type<tc>, window_params = [{transform_indices = @transform_0, window_bounds = array<i64: 1, 9, 72>}, {transform_indices = @transform_1, window_bounds = array<i64: 1, 9, 72>}, {pipeline_mode = #tpu.pipeline_mode<synchronous>, transform_indices = @transform_2, window_bounds = array<i64: 3, 72, 288>}, {pipeline_mode = #tpu.pipeline_mode<synchronous>, transform_indices = @transform_3, window_bounds = array<i64: 3, 288, 128>}, {pipeline_mode = #tpu.pipeline_mode<synchronous>, transform_indices = @transform_4, window_bounds = array<i64: 2, 288, 128>}, {pipeline_mode = #tpu.pipeline_mode<synchronous>, transform_indices = @transform_5, window_bounds = array<i64: 8, 8>}, {pipeline_mode = #tpu.pipeline_mode<synchronous>, transform_indices = @transform_6, window_bounds = array<i64: 72, 128>}, {pipeline_mode = #tpu.pipeline_mode<synchronous>, transform_indices = @transform_7, window_bounds = array<i64: 72, 128>}, {pipeline_mode = #tpu.pipeline_mode<synchronous>, transform_indices = @transform_8, window_bounds = array<i64: 128, 128>}, {pipeline_mode = #tpu.pipeline_mode<synchronous>, transform_indices = @transform_9, window_bounds = array<i64: 128, 128>}, {pipeline_mode = #tpu.pipeline_mode<synchronous>, transform_indices = @transform_10, window_bounds = array<i64: 1, 288>}, {pipeline_mode = #tpu.pipeline_mode<synchronous>, transform_indices = @transform_11, window_bounds = array<i64: 1, 128>}, {pipeline_mode = #tpu.pipeline_mode<synchronous>, transform_indices = @transform_12, window_bounds = array<i64: 1, 128>}, {transform_indices = @transform_13, window_bounds = array<i64: 1, 8, 128>}]} {
    %c0 = arith.constant 0 : index
    %c0_0 = arith.constant 0 : index
    %c0_1 = arith.constant 0 : index
    %0 = vector.load %arg1[%c0, %c0_0, %c0_1] : memref<1x9x72xf32, #tpu.memory_space<vmem>>, vector<1x9x72xf32>
    %1 = vector.shape_cast %0 : vector<1x9x72xf32> to vector<9x72xf32>
    %c0_2 = arith.constant 0 : index
    %c0_3 = arith.constant 0 : index
    %c0_4 = arith.constant 0 : index
    %2 = vector.load %arg2[%c0_2, %c0_3, %c0_4] : memref<1x9x72xf32, #tpu.memory_space<vmem>>, vector<1x9x72xf32>
    %3 = vector.shape_cast %2 : vector<1x9x72xf32> to vector<9x72xf32>
    %4 = vector.extract_strided_slice %1 {offsets = [0, 0], sizes = [8, 72], strides = [1, 1]} : vector<9x72xf32> to vector<8x72xf32>
    %5 = vector.extract_strided_slice %1 {offsets = [1, 0], sizes = [8, 72], strides = [1, 1]} : vector<9x72xf32> to vector<8x72xf32>
    %6 = vector.extract_strided_slice %3 {offsets = [0, 0], sizes = [8, 72], strides = [1, 1]} : vector<9x72xf32> to vector<8x72xf32>
    %7 = vector.extract_strided_slice %3 {offsets = [1, 0], sizes = [8, 72], strides = [1, 1]} : vector<9x72xf32> to vector<8x72xf32>
    %c0_5 = arith.constant 0 : index
    %c0_6 = arith.constant 0 : index
    %8 = vector.load %arg11[%c0_5, %c0_6] : memref<1x288xf32, #tpu.memory_space<vmem>>, vector<1x288xf32>
    %c0_7 = arith.constant 0 : index
    %c0_8 = arith.constant 0 : index
    %c0_9 = arith.constant 0 : index
    %9 = vector.load %arg3[%c0_7, %c0_8, %c0_9] : memref<3x72x288xf32, #tpu.memory_space<vmem>>, vector<1x72x288xf32>
    %10 = vector.shape_cast %9 : vector<1x72x288xf32> to vector<72x288xf32>
    %cst = arith.constant dense<0.000000e+00> : vector<8x288xf32>
    %11 = tpu.matmul %4, %10, %cst {dimension_numbers = #tpu.dot_dimension_numbers<[1], [0], [0], [1], [0, 0, 1, 1], [], []>} : vector<8x72xf32>, vector<72x288xf32>, vector<8x288xf32> -> vector<8x288xf32>
    %12 = vector.broadcast %8 : vector<1x288xf32> to vector<8x288xf32>
    %13 = arith.addf %12, %11 : vector<8x288xf32>
    %c1 = arith.constant 1 : index
    %c0_10 = arith.constant 0 : index
    %c0_11 = arith.constant 0 : index
    %14 = vector.load %arg3[%c1, %c0_10, %c0_11] : memref<3x72x288xf32, #tpu.memory_space<vmem>>, vector<1x72x288xf32>
    %15 = vector.shape_cast %14 : vector<1x72x288xf32> to vector<72x288xf32>
    %cst_12 = arith.constant dense<0.000000e+00> : vector<8x288xf32>
    %16 = tpu.matmul %6, %15, %cst_12 {dimension_numbers = #tpu.dot_dimension_numbers<[1], [0], [0], [1], [0, 0, 1, 1], [], []>} : vector<8x72xf32>, vector<72x288xf32>, vector<8x288xf32> -> vector<8x288xf32>
    %17 = arith.addf %13, %16 : vector<8x288xf32>
    %c2 = arith.constant 2 : index
    %c0_13 = arith.constant 0 : index
    %c0_14 = arith.constant 0 : index
    %18 = vector.load %arg3[%c2, %c0_13, %c0_14] : memref<3x72x288xf32, #tpu.memory_space<vmem>>, vector<1x72x288xf32>
    %19 = vector.shape_cast %18 : vector<1x72x288xf32> to vector<72x288xf32>
    %cst_15 = arith.constant dense<0.000000e+00> : vector<8x288xf32>
    %20 = tpu.matmul %5, %19, %cst_15 {dimension_numbers = #tpu.dot_dimension_numbers<[1], [0], [0], [1], [0, 0, 1, 1], [], []>} : vector<8x72xf32>, vector<72x288xf32>, vector<8x288xf32> -> vector<8x288xf32>
    %21 = arith.addf %17, %20 : vector<8x288xf32>
    %c0_16 = arith.constant 0 : index
    %c0_17 = arith.constant 0 : index
    %c0_18 = arith.constant 0 : index
    %22 = vector.load %arg3[%c0_16, %c0_17, %c0_18] : memref<3x72x288xf32, #tpu.memory_space<vmem>>, vector<1x72x288xf32>
    %23 = vector.shape_cast %22 : vector<1x72x288xf32> to vector<72x288xf32>
    %cst_19 = arith.constant dense<0.000000e+00> : vector<8x288xf32>
    %24 = tpu.matmul %6, %23, %cst_19 {dimension_numbers = #tpu.dot_dimension_numbers<[1], [0], [0], [1], [0, 0, 1, 1], [], []>} : vector<8x72xf32>, vector<72x288xf32>, vector<8x288xf32> -> vector<8x288xf32>
    %25 = vector.broadcast %8 : vector<1x288xf32> to vector<8x288xf32>
    %26 = arith.addf %25, %24 : vector<8x288xf32>
    %c1_20 = arith.constant 1 : index
    %c0_21 = arith.constant 0 : index
    %c0_22 = arith.constant 0 : index
    %27 = vector.load %arg3[%c1_20, %c0_21, %c0_22] : memref<3x72x288xf32, #tpu.memory_space<vmem>>, vector<1x72x288xf32>
    %28 = vector.shape_cast %27 : vector<1x72x288xf32> to vector<72x288xf32>
    %cst_23 = arith.constant dense<0.000000e+00> : vector<8x288xf32>
    %29 = tpu.matmul %5, %28, %cst_23 {dimension_numbers = #tpu.dot_dimension_numbers<[1], [0], [0], [1], [0, 0, 1, 1], [], []>} : vector<8x72xf32>, vector<72x288xf32>, vector<8x288xf32> -> vector<8x288xf32>
    %30 = arith.addf %26, %29 : vector<8x288xf32>
    %c2_24 = arith.constant 2 : index
    %c0_25 = arith.constant 0 : index
    %c0_26 = arith.constant 0 : index
    %31 = vector.load %arg3[%c2_24, %c0_25, %c0_26] : memref<3x72x288xf32, #tpu.memory_space<vmem>>, vector<1x72x288xf32>
    %32 = vector.shape_cast %31 : vector<1x72x288xf32> to vector<72x288xf32>
    %cst_27 = arith.constant dense<0.000000e+00> : vector<8x288xf32>
    %33 = tpu.matmul %7, %32, %cst_27 {dimension_numbers = #tpu.dot_dimension_numbers<[1], [0], [0], [1], [0, 0, 1, 1], [], []>} : vector<8x72xf32>, vector<72x288xf32>, vector<8x288xf32> -> vector<8x288xf32>
    %34 = arith.addf %30, %33 : vector<8x288xf32>
    %c0_28 = arith.constant 0 : index
    %c0_29 = arith.constant 0 : index
    %35 = vector.load %arg12[%c0_28, %c0_29] : memref<1x128xf32, #tpu.memory_space<vmem>>, vector<1x128xf32>
    %c1_30 = arith.constant 1 : index
    %c0_31 = arith.constant 0 : index
    %c0_32 = arith.constant 0 : index
    %36 = vector.load %arg4[%c1_30, %c0_31, %c0_32] : memref<3x288x128xf32, #tpu.memory_space<vmem>>, vector<1x288x128xf32>
    %37 = vector.shape_cast %36 : vector<1x288x128xf32> to vector<288x128xf32>
    %cst_33 = arith.constant dense<0.000000e+00> : vector<8x128xf32>
    %38 = tpu.matmul %21, %37, %cst_33 {dimension_numbers = #tpu.dot_dimension_numbers<[1], [0], [0], [1], [0, 0, 1, 1], [], []>} : vector<8x288xf32>, vector<288x128xf32>, vector<8x128xf32> -> vector<8x128xf32>
    %39 = vector.broadcast %35 : vector<1x128xf32> to vector<8x128xf32>
    %40 = arith.addf %39, %38 : vector<8x128xf32>
    %c2_34 = arith.constant 2 : index
    %c0_35 = arith.constant 0 : index
    %c0_36 = arith.constant 0 : index
    %41 = vector.load %arg4[%c2_34, %c0_35, %c0_36] : memref<3x288x128xf32, #tpu.memory_space<vmem>>, vector<1x288x128xf32>
    %42 = vector.shape_cast %41 : vector<1x288x128xf32> to vector<288x128xf32>
    %cst_37 = arith.constant dense<0.000000e+00> : vector<8x128xf32>
    %43 = tpu.matmul %34, %42, %cst_37 {dimension_numbers = #tpu.dot_dimension_numbers<[1], [0], [0], [1], [0, 0, 1, 1], [], []>} : vector<8x288xf32>, vector<288x128xf32>, vector<8x128xf32> -> vector<8x128xf32>
    %44 = arith.addf %40, %43 : vector<8x128xf32>
    %c0_38 = arith.constant 0 : index
    %c0_39 = arith.constant 0 : index
    %45 = vector.load %arg6[%c0_38, %c0_39] : memref<8x8xf32, #tpu.memory_space<vmem>>, vector<8x8xf32>
    %c0_40 = arith.constant 0 : index
    %c0_41 = arith.constant 0 : index
    %c0_42 = arith.constant 0 : index
    %46 = vector.load %arg4[%c0_40, %c0_41, %c0_42] : memref<3x288x128xf32, #tpu.memory_space<vmem>>, vector<1x288x128xf32>
    %47 = vector.shape_cast %46 : vector<1x288x128xf32> to vector<288x128xf32>
    %cst_43 = arith.constant dense<0.000000e+00> : vector<8x128xf32>
    %48 = tpu.matmul %34, %47, %cst_43 {dimension_numbers = #tpu.dot_dimension_numbers<[1], [0], [0], [1], [0, 0, 1, 1], [], []>} : vector<8x288xf32>, vector<288x128xf32>, vector<8x128xf32> -> vector<8x128xf32>
    %cst_44 = arith.constant dense<0.000000e+00> : vector<8x128xf32>
    %49 = tpu.matmul %45, %48, %cst_44 {dimension_numbers = #tpu.dot_dimension_numbers<[1], [0], [0], [1], [0, 0, 1, 1], [], []>} : vector<8x8xf32>, vector<8x128xf32>, vector<8x128xf32> -> vector<8x128xf32>
    %50 = arith.addf %44, %49 : vector<8x128xf32>
    %cst_45 = arith.constant 5.000000e-01 : f32
    %51 = vector.broadcast %cst_45 : f32 to vector<8x128xf32>
    %52 = arith.mulf %51, %50 : vector<8x128xf32>
    %cst_46 = arith.constant 1.41421354 : f32
    %53 = vector.broadcast %cst_46 : f32 to vector<8x128xf32>
    %54 = arith.divf %50, %53 : vector<8x128xf32>
    %cst_47 = arith.constant 0.000000e+00 : f32
    %55 = vector.broadcast %cst_47 : f32 to vector<8x128xf32>
    %56 = arith.cmpf oge, %54, %55 : vector<8x128xf32>
    %cst_48 = arith.constant 1.000000e+00 : f32
    %cst_49 = arith.constant -1.000000e+00 : f32
    %57 = vector.broadcast %cst_48 : f32 to vector<8x128xf32>
    %58 = vector.broadcast %cst_49 : f32 to vector<8x128xf32>
    %59 = arith.select %56, %57, %58 : vector<8x128xi1>, vector<8x128xf32>
    %60 = math.absf %54 : vector<8x128xf32>
    %cst_50 = arith.constant 0.327591091 : f32
    %61 = vector.broadcast %cst_50 : f32 to vector<8x128xf32>
    %62 = arith.mulf %61, %60 : vector<8x128xf32>
    %cst_51 = arith.constant 1.000000e+00 : f32
    %63 = vector.broadcast %cst_51 : f32 to vector<8x128xf32>
    %64 = arith.addf %63, %62 : vector<8x128xf32>
    %65 = tpu.reciprocal %64 {approx = true} : vector<8x128xf32> -> vector<8x128xf32>
    %cst_52 = arith.constant 1.06140542 : f32
    %66 = vector.broadcast %cst_52 : f32 to vector<8x128xf32>
    %67 = arith.mulf %66, %65 : vector<8x128xf32>
    %cst_53 = arith.constant -1.45315206 : f32
    %68 = vector.broadcast %cst_53 : f32 to vector<8x128xf32>
    %69 = arith.addf %67, %68 : vector<8x128xf32>
    %70 = arith.mulf %69, %65 : vector<8x128xf32>
    %cst_54 = arith.constant 1.42141378 : f32
    %71 = vector.broadcast %cst_54 : f32 to vector<8x128xf32>
    %72 = arith.addf %70, %71 : vector<8x128xf32>
    %73 = arith.mulf %72, %65 : vector<8x128xf32>
    %cst_55 = arith.constant -0.284496725 : f32
    %74 = vector.broadcast %cst_55 : f32 to vector<8x128xf32>
    %75 = arith.addf %73, %74 : vector<8x128xf32>
    %76 = arith.mulf %75, %65 : vector<8x128xf32>
    %cst_56 = arith.constant 0.254829586 : f32
    %77 = vector.broadcast %cst_56 : f32 to vector<8x128xf32>
    %78 = arith.addf %76, %77 : vector<8x128xf32>
    %79 = arith.mulf %78, %65 : vector<8x128xf32>
    %cst_57 = arith.constant 0.000000e+00 : f32
    %80 = vector.broadcast %cst_57 : f32 to vector<8x128xf32>
    %81 = arith.subf %80, %60 : vector<8x128xf32>
    %82 = arith.mulf %81, %60 : vector<8x128xf32>
    %83 = math.exp %82 : vector<8x128xf32>
    %84 = arith.mulf %79, %83 : vector<8x128xf32>
    %cst_58 = arith.constant 1.000000e+00 : f32
    %85 = vector.broadcast %cst_58 : f32 to vector<8x128xf32>
    %86 = arith.subf %85, %84 : vector<8x128xf32>
    %87 = arith.mulf %59, %86 : vector<8x128xf32>
    %cst_59 = arith.constant 1.000000e+00 : f32
    %88 = vector.broadcast %cst_59 : f32 to vector<8x128xf32>
    %89 = arith.addf %88, %87 : vector<8x128xf32>
    %90 = arith.mulf %52, %89 : vector<8x128xf32>
    %91 = arith.maximumf %21, %34 : vector<8x288xf32>
    %c0_60 = arith.constant 0 : index
    %c0_61 = arith.constant 0 : index
    %c0_62 = arith.constant 0 : index
    %92 = vector.load %arg5[%c0_60, %c0_61, %c0_62] : memref<2x288x128xf32, #tpu.memory_space<vmem>>, vector<1x288x128xf32>
    %93 = vector.shape_cast %92 : vector<1x288x128xf32> to vector<288x128xf32>
    %cst_63 = arith.constant dense<0.000000e+00> : vector<8x128xf32>
    %94 = tpu.matmul %91, %93, %cst_63 {dimension_numbers = #tpu.dot_dimension_numbers<[1], [0], [0], [1], [0, 0, 1, 1], [], []>} : vector<8x288xf32>, vector<288x128xf32>, vector<8x128xf32> -> vector<8x128xf32>
    %c1_64 = arith.constant 1 : index
    %c0_65 = arith.constant 0 : index
    %c0_66 = arith.constant 0 : index
    %95 = vector.load %arg5[%c1_64, %c0_65, %c0_66] : memref<2x288x128xf32, #tpu.memory_space<vmem>>, vector<1x288x128xf32>
    %96 = vector.shape_cast %95 : vector<1x288x128xf32> to vector<288x128xf32>
    %cst_67 = arith.constant dense<0.000000e+00> : vector<8x128xf32>
    %97 = tpu.matmul %91, %96, %cst_67 {dimension_numbers = #tpu.dot_dimension_numbers<[1], [0], [0], [1], [0, 0, 1, 1], [], []>} : vector<8x288xf32>, vector<288x128xf32>, vector<8x128xf32> -> vector<8x128xf32>
    %98 = arith.maximumf %94, %97 : vector<8x128xf32>
    %c0_68 = arith.constant 0 : index
    %c0_69 = arith.constant 0 : index
    %99 = vector.load %arg13[%c0_68, %c0_69] : memref<1x128xf32, #tpu.memory_space<vmem>>, vector<1x128xf32>
    %c0_70 = arith.constant 0 : index
    %c0_71 = arith.constant 0 : index
    %100 = vector.load %arg7[%c0_70, %c0_71] : memref<72x128xf32, #tpu.memory_space<vmem>>, vector<72x128xf32>
    %cst_72 = arith.constant dense<0.000000e+00> : vector<8x128xf32>
    %101 = tpu.matmul %6, %100, %cst_72 {dimension_numbers = #tpu.dot_dimension_numbers<[1], [0], [0], [1], [0, 0, 1, 1], [], []>} : vector<8x72xf32>, vector<72x128xf32>, vector<8x128xf32> -> vector<8x128xf32>
    %102 = vector.broadcast %99 : vector<1x128xf32> to vector<8x128xf32>
    %103 = arith.addf %102, %101 : vector<8x128xf32>
    %c0_73 = arith.constant 0 : index
    %c0_74 = arith.constant 0 : index
    %104 = vector.load %arg8[%c0_73, %c0_74] : memref<72x128xf32, #tpu.memory_space<vmem>>, vector<72x128xf32>
    %cst_75 = arith.constant dense<0.000000e+00> : vector<8x128xf32>
    %105 = tpu.matmul %5, %104, %cst_75 {dimension_numbers = #tpu.dot_dimension_numbers<[1], [0], [0], [1], [0, 0, 1, 1], [], []>} : vector<8x72xf32>, vector<72x128xf32>, vector<8x128xf32> -> vector<8x128xf32>
    %106 = arith.addf %103, %105 : vector<8x128xf32>
    %c0_76 = arith.constant 0 : index
    %c0_77 = arith.constant 0 : index
    %107 = vector.load %arg9[%c0_76, %c0_77] : memref<128x128xf32, #tpu.memory_space<vmem>>, vector<128x128xf32>
    %cst_78 = arith.constant dense<0.000000e+00> : vector<8x128xf32>
    %108 = tpu.matmul %90, %107, %cst_78 {dimension_numbers = #tpu.dot_dimension_numbers<[1], [0], [0], [1], [0, 0, 1, 1], [], []>} : vector<8x128xf32>, vector<128x128xf32>, vector<8x128xf32> -> vector<8x128xf32>
    %109 = arith.addf %106, %108 : vector<8x128xf32>
    %c0_79 = arith.constant 0 : index
    %c0_80 = arith.constant 0 : index
    %110 = vector.load %arg10[%c0_79, %c0_80] : memref<128x128xf32, #tpu.memory_space<vmem>>, vector<128x128xf32>
    %cst_81 = arith.constant dense<0.000000e+00> : vector<8x128xf32>
    %111 = tpu.matmul %98, %110, %cst_81 {dimension_numbers = #tpu.dot_dimension_numbers<[1], [0], [0], [1], [0, 0, 1, 1], [], []>} : vector<8x128xf32>, vector<128x128xf32>, vector<8x128xf32> -> vector<8x128xf32>
    %112 = arith.addf %109, %111 : vector<8x128xf32>
    %c0_82 = arith.constant 0 : index
    %c0_83 = arith.constant 0 : index
    %c0_84 = arith.constant 0 : index
    %113 = vector.load %arg14[%c0_82, %c0_83, %c0_84] : memref<1x8x128xf32, #tpu.memory_space<vmem>>, vector<1x8x128xf32>
    %114 = vector.shape_cast %113 : vector<1x8x128xf32> to vector<8x128xf32>
    %115 = vector.shape_cast %112 : vector<8x128xf32> to vector<1x8x128xf32>
    tpu.vector_store %arg14[%c0_82, %c0_83, %c0_84], %115 {strides = array<i32>} : memref<1x8x128xf32, #tpu.memory_space<vmem>>, vector<1x8x128xf32>,
    return
  }
  func.func @transform_0(%arg0: i32) -> (i32, i32, i32) {
    %c0_i32 = arith.constant 0 : i32
    %c0_i32_0 = arith.constant 0 : i32
    %c0_i32_1 = arith.constant 0 : i32
    return %arg0, %c0_i32, %c0_i32_0 : i32, i32, i32
  }
  func.func @transform_1(%arg0: i32) -> (i32, i32, i32) {
    %c0_i32 = arith.constant 0 : i32
    %c0_i32_0 = arith.constant 0 : i32
    %c0_i32_1 = arith.constant 0 : i32
    return %arg0, %c0_i32, %c0_i32_0 : i32, i32, i32
  }
  func.func @transform_2(%arg0: i32) -> (i32, i32, i32) {
    %c0_i32 = arith.constant 0 : i32
    %c0_i32_0 = arith.constant 0 : i32
    %c0_i32_1 = arith.constant 0 : i32
    %c0_i32_2 = arith.constant 0 : i32
    return %c0_i32, %c0_i32_0, %c0_i32_1 : i32, i32, i32
  }
  func.func @transform_3(%arg0: i32) -> (i32, i32, i32) {
    %c0_i32 = arith.constant 0 : i32
    %c0_i32_0 = arith.constant 0 : i32
    %c0_i32_1 = arith.constant 0 : i32
    %c0_i32_2 = arith.constant 0 : i32
    return %c0_i32, %c0_i32_0, %c0_i32_1 : i32, i32, i32
  }
  func.func @transform_4(%arg0: i32) -> (i32, i32, i32) {
    %c0_i32 = arith.constant 0 : i32
    %c0_i32_0 = arith.constant 0 : i32
    %c0_i32_1 = arith.constant 0 : i32
    %c0_i32_2 = arith.constant 0 : i32
    return %c0_i32, %c0_i32_0, %c0_i32_1 : i32, i32, i32
  }
  func.func @transform_5(%arg0: i32) -> (i32, i32) {
    %c0_i32 = arith.constant 0 : i32
    %c0_i32_0 = arith.constant 0 : i32
    %c0_i32_1 = arith.constant 0 : i32
    return %c0_i32, %c0_i32_0 : i32, i32
  }
  func.func @transform_6(%arg0: i32) -> (i32, i32) {
    %c0_i32 = arith.constant 0 : i32
    %c0_i32_0 = arith.constant 0 : i32
    %c0_i32_1 = arith.constant 0 : i32
    return %c0_i32, %c0_i32_0 : i32, i32
  }
  func.func @transform_7(%arg0: i32) -> (i32, i32) {
    %c0_i32 = arith.constant 0 : i32
    %c0_i32_0 = arith.constant 0 : i32
    %c0_i32_1 = arith.constant 0 : i32
    return %c0_i32, %c0_i32_0 : i32, i32
  }
  func.func @transform_8(%arg0: i32) -> (i32, i32) {
    %c0_i32 = arith.constant 0 : i32
    %c0_i32_0 = arith.constant 0 : i32
    %c0_i32_1 = arith.constant 0 : i32
    return %c0_i32, %c0_i32_0 : i32, i32
  }
  func.func @transform_9(%arg0: i32) -> (i32, i32) {
    %c0_i32 = arith.constant 0 : i32
    %c0_i32_0 = arith.constant 0 : i32
    %c0_i32_1 = arith.constant 0 : i32
    return %c0_i32, %c0_i32_0 : i32, i32
  }
  func.func @transform_10(%arg0: i32) -> (i32, i32) {
    %c0_i32 = arith.constant 0 : i32
    %c0_i32_0 = arith.constant 0 : i32
    %c0_i32_1 = arith.constant 0 : i32
    return %c0_i32, %c0_i32_0 : i32, i32
  }
  func.func @transform_11(%arg0: i32) -> (i32, i32) {
    %c0_i32 = arith.constant 0 : i32
    %c0_i32_0 = arith.constant 0 : i32
    %c0_i32_1 = arith.constant 0 : i32
    return %c0_i32, %c0_i32_0 : i32, i32
  }
  func.func @transform_12(%arg0: i32) -> (i32, i32) {
    %c0_i32 = arith.constant 0 : i32
    %c0_i32_0 = arith.constant 0 : i32
    %c0_i32_1 = arith.constant 0 : i32
    return %c0_i32, %c0_i32_0 : i32, i32
  }
  func.func @transform_13(%arg0: i32) -> (i32, i32, i32) {
    %c0_i32 = arith.constant 0 : i32
    %c0_i32_0 = arith.constant 0 : i32
    %c0_i32_1 = arith.constant 0 : i32
    return %arg0, %c0_i32, %c0_i32_0 : i32, i32, i32
  }
}

</mosaic_0001>

<bundles_post_ra>
// kernel: tpu_custom_call.1
= control target key start
LH: loop header
LB: loop body
LE: loop exit
PB: predicated region body
PF: predicated region fallthrough
CT: control target
= control target key end

     0   :  { %s4933_s0 = inlined_call_operand.vmem [shape: f32[2,9,72], index: 0, kind: input, shape index: {}]   ;;  %s4934_s1 = inlined_call_operand.vmem [shape: f32[2,9,72], index: 1, kind: input, shape index: {}]   ;;  %s4935_s2 = inlined_call_operand.hbm [shape: f32[3,72,288], index: 2, kind: input, shape index: {}]   ;;  %s4936_s3 = inlined_call_operand.hbm [shape: f32[3,288,128], index: 3, kind: input, shape index: {}]   ;;  %s4937_s4 = inlined_call_operand.hbm [shape: f32[2,288,128], index: 4, kind: input, shape index: {}]   ;;  %s4938_s5 = inlined_call_operand.vmem [shape: f32[8,8], index: 5, kind: input, shape index: {}]   ;;  %s4939_s6 = inlined_call_operand.vmem [shape: f32[72,128], index: 6, kind: input, shape index: {}]   ;;  %s4940_s7 = inlined_call_operand.hbm [shape: f32[72,128], index: 7, kind: input, shape index: {}]   ;;  %s4941_s8 = inlined_call_operand.hbm [shape: f32[128,128], index: 8, kind: input, shape index: {}]   ;;  %s4942_s9 = inlined_call_operand.hbm [shape: f32[128,128], index: 9, kind: input, shape index: {}]   ;;  %s4943_s10 = inlined_call_operand.vmem [shape: f32[1,288], index: 10, kind: input, shape index: {}]   ;;  %s4944_s11 = inlined_call_operand.vmem [shape: f32[1,128], index: 11, kind: input, shape index: {}]   ;;  %s4945_s12 = inlined_call_operand.vmem [shape: f32[1,128], index: 12, kind: input, shape index: {}]   ;;  %s4946_s13 = inlined_call_operand.hbm [shape: f32[2,8,128], index: 13, kind: output, shape index: {}]  }
   0x1   :  { %4979 = sst [smem:[#allocation46_spill]] %s4936_s3 }
   0x2   :  { %18 = vsyncpa [#allocation3], 0 }
   0x3   :  { %19 = vsyncpa [#allocation6], 0 }
   0x4   :  { %20 = vsyncpa [#allocation9], 0 }
   0x5   :  { %21 = vsyncpa [#allocation12], 0 }
   0x6   :  { %22 = vsyncpa [#allocation4], 0 }
   0x7   :  { %24 = vsyncpa [#allocation4 + $0x1], 0  ;;  %s4124_s25 = smov 0   ;;  %s4126_s26 = smov 0  }
   0x8   :  { %s4128_s27 = smov 0   ;;  %s4130_s28 = smov 0  }
   0x9 LB: > { %4980 = sst [smem:[#allocation19_spill]] %s4026_s25  ;;  %s4145_s29 = sadd.s32 4294967295, %s4038_s28   ;;  %s4038_s28 = sphi %s4130_s28, %s5047_s28   ;;  %s4034_s27 = sphi %s4128_s27, %s5049_s27   ;;  %s4030_s26 = sphi %s4126_s26, %s5051_s26   ;;  %s4026_s25 = sphi %s4124_s25, %s5050_s25  }
   0xa   : > { %4981 = sst [smem:[#allocation20_spill]] %s4034_s27  ;;  %s3031_s30 = sadd.s32 4294967294, %s4038_s28  }
   0xb   : > { %s4149_s14 = sadd.s32 1, %s4038_s28   ;;  %s320_s15 = sadd.s32 1, %s4034_s27 }
   0xc   : > { %4982 = sst [smem:[#allocation21_spill]] %s4149_s14  ;;  %s317_s16 = ssub.s32 %s4038_s28, %s4149_s14 }
   0xd   : > { %p330_p0 = scmp.ne.s32.totalorder %s4034_s27, %s4030_s26  ;;  %p318_p1 = scmp.eq.s32.totalorder %s317_s16, 0 }
   0xe   : > { %p331_p2 = scmp.eq.s32.totalorder %s4145_s29, 1  ;;  %p336_p3 = scmp.ne.s32.totalorder %s4030_s26, %s4026_s25 }
   0xf   : > { %p337_p4 = scmp.eq.s32.totalorder %s3031_s30, 1  ;;  %p3032_p7 = scmp.ge.s32.totalorder %s4038_s28, 1 }
  0x10   : > { %s4160_s17 = scalar_select %p318_p1, %s4034_s27, %s320_s15  }
  0x11   : > { %p4162_p5 = por %p331_p2, %p330_p0  ;;  %p4166_p6 = por %p337_p4, %p336_p3 }
  0x12   : > { %4983 = sst [smem:[#allocation22_spill]] %s4160_s17  ;;  %p344_p8 = scmp.lt.s32.totalorder %s4038_s28, 3 }
  0x13   : > { %s4985_s19 = scalar_select %p4166_p6, 1, 0 }
  0x14   : > { %p4952_p9 = scmp.eq.s32.totalorder %s4145_s29, 0  ;;  %p4173_p10 = pnand %p3032_p7, %p344_p8 }
  0x15   : > { %4986 = sst [smem:[#allocation23_spill]] %s4985_s19  ;;  %s4040_s21 = smov [#allocation5]  }
  0x16   : > { %s369_s22 = sshll.u32 %s4040_s21, 4  ;;  %p3720_p11 = pneg %p4173_p10  ;;  %s370_s22 = int_to_ptr.vmem [resolvable:$true] %s369_s22 }
  0x17   : > { %s4041_s24 = smov [#allocation8]   ;;  %s4042_s15 = smov [#allocation2]  }
  0x18   : > { %p4181_p12 = pnand %p4952_p9, %p3720_p11  ;;  %s401_s30 = sshll.u32 %s4041_s24, 4  ;;  %s402_s30 = int_to_ptr.vmem [resolvable:$true] %s401_s30 }
  0x19   : > { %s356_s16 = sshll.u32 %s4042_s15, 4  ;;  %s3817_s21 = scalar_lea.vmem %s370_s22, 13824  ;;  %s357_s16 = int_to_ptr.vmem [resolvable:$true] %s356_s16 }
  0x1a   : > { %p4187_p13 = pneg %p4181_p12  ;;  %p3818_p0 = scmp.ne.s32.totalorder %s370_s22, %s3817_s21 }
  0x1b   : > { %p3825_p3 = scmp.lt.s32.totalorder %s370_s22, %s370_s22  ;;  %p3826_p4 = scmp.lt.s32.totalorder %s3817_s21, %s3817_s21 }
  0x1c   : > { %p3820_p1 = pnand %p3818_p0, %p4187_p13 }
  0x1d   : > { %p3827_p7 = por %p3826_p4, %p3825_p3 }
  0x1e   : > { %p3821_p2 = pneg %p3820_p1 }
  0x20   : > { %p3828_p8 = pnand %p3827_p7, %p3821_p2 }
  0x22   : > { %3831 = shalt.err (!%p3828_p8)
}
  0x23   : > { %s4953_s24 = smov 128   ;;  %s4955_s15 = smov 8  }
  0x24   : > { %s4990_s3 = sld [smem:[#allocation46_spill]]  ;;  %s3843_s19 = scalar_lea.vmem %s402_s30, 1152 }
  0x25   : > { %p3844_p11 = scmp.ne.s32.totalorder %s402_s30, %s3843_s19  ;;  %p3851_p3 = scmp.lt.s32.totalorder %s402_s30, %s402_s30 }
  0x26   : > { %p3852_p2 = scmp.lt.s32.totalorder %s3843_s19, %s3843_s19 }
  0x27   : > { %p3846_p0 = pnand %p3844_p11, %p4187_p13 }
  0x28   : > { %p3853_p4 = por %p3852_p2, %p3851_p3 }
  0x29   : > { %p3847_p1 = pneg %p3846_p0 }
  0x2a   : > { %3726 = dma.hbm_to_vmem [thread:$0]  (!%p4181_p12), %s4990_s3, 13824, %s370_s22, [#allocation6], %s4953_s24, %s4953_s24, %s4955_s15  }
  0x2b   : > { %p3854_p7 = pnand %p3853_p4, %p3847_p1 }
  0x2d   : > { %3857 = shalt.err (!%p3854_p7)
}
  0x2e   : > { %3732 = dma.hbm_to_vmem [thread:$0]  (!%p4181_p12), %s4940_s7, 1152, %s402_s30, [#allocation9], %s4953_s24, %s4953_s24, %s4955_s15  }
  0x2f   : > { %s3869_s27 = scalar_lea.vmem %s357_s16, 10368  ;;  %p3877_p9 = scmp.lt.s32.totalorder %s357_s16, %s357_s16 }
  0x30   : > { %p3870_p8 = scmp.ne.s32.totalorder %s357_s16, %s3869_s27  ;;  %p3878_p3 = scmp.lt.s32.totalorder %s3869_s27, %s3869_s27 }
  0x32   : > { %p3872_p11 = pnand %p3870_p8, %p4187_p13  ;;  %p3879_p1 = por %p3878_p3, %p3877_p9 }
  0x34   : > { %p3873_p0 = pneg %p3872_p11 }
  0x36   : > { %p3880_p2 = pnand %p3879_p1, %p3873_p0 }
  0x38   : > { %3883 = shalt.err (!%p3880_p2)
}
  0x39   : > { %s4045_s14 = smov 384   ;;  %s4046_s19 = smov 24  }
  0x3a   : > { %3723 = dma.hbm_to_vmem [thread:$0]  (!%p4181_p12), %s4935_s2, 10368, %s357_s16, [#allocation3], %s4045_s14, %s4045_s14, %s4046_s19  }
  0x3b   : > { %s4047_s30 = smov [#allocation7]   ;;  %s4048_s24 = smov [#allocation10]  }
  0x3c   : > { %s382_s21 = sshll.u32 %s4047_s30, 4  ;;  %s414_s15 = sshll.u32 %s4048_s24, 4  ;;  %s383_s21 = int_to_ptr.vmem [resolvable:$true] %s382_s21  ;;  %s415_s15 = int_to_ptr.vmem [resolvable:$true] %s414_s15 }
  0x3d   : > { %s3895_s3 = scalar_lea.vmem %s383_s21, 9216  ;;  %p3903_p8 = scmp.lt.s32.totalorder %s383_s21, %s383_s21 }
  0x3e   : > { %p3896_p4 = scmp.ne.s32.totalorder %s383_s21, %s3895_s3  ;;  %p3904_p11 = scmp.lt.s32.totalorder %s3895_s3, %s3895_s3 }
  0x40   : > { %p3898_p9 = pnand %p3896_p4, %p4187_p13  ;;  %p3905_p0 = por %p3904_p11, %p3903_p8 }
  0x42   : > { %p3899_p7 = pneg %p3898_p9 }
  0x44   : > { %p3906_p3 = pnand %p3905_p0, %p3899_p7 }
  0x46   : > { %3909 = shalt.err (!%p3906_p3)
}
  0x47   : > { %s4991_s27 = smov 8   ;;  %s4992_s22 = smov 128  }
  0x48   : > { %3729 = dma.hbm_to_vmem [thread:$0]  (!%p4181_p12), %s4937_s4, 9216, %s383_s21, [#allocation6], %s4992_s22, %s4992_s22, %s4991_s27  }
  0x49   : > { %s3921_s24 = scalar_lea.vmem %s415_s15, 2048  ;;  %p3929_p9 = scmp.lt.s32.totalorder %s415_s15, %s415_s15 }
  0x4a   : > { %p3922_p1 = scmp.ne.s32.totalorder %s415_s15, %s3921_s24  ;;  %p3930_p8 = scmp.lt.s32.totalorder %s3921_s24, %s3921_s24 }
  0x4c   : > { %p3924_p2 = pnand %p3922_p1, %p4187_p13  ;;  %p3931_p7 = por %p3930_p8, %p3929_p9 }
  0x4e   : > { %p3925_p4 = pneg %p3924_p2 }
  0x50   : > { %p3932_p11 = pnand %p3931_p7, %p3925_p4 }
  0x52   : > { %3935 = shalt.err (!%p3932_p11)
}
  0x53   : > { %3735 = dma.hbm_to_vmem [thread:$0]  (!%p4181_p12), %s4941_s8, 2048, %s415_s15, [#allocation9], %s4992_s22, %s4992_s22, %s4991_s27  }
  0x54   : > { %s4049_s25 = smov [#allocation11]  }
  0x55   : > { %s427_s30 = sshll.u32 %s4049_s25, 4  ;;  %s428_s30 = int_to_ptr.vmem [resolvable:$true] %s427_s30 }
  0x56   : > { %s3947_s21 = scalar_lea.vmem %s428_s30, 2048  ;;  %p3955_p2 = scmp.lt.s32.totalorder %s428_s30, %s428_s30 }
  0x57   : > { %p3948_p0 = scmp.ne.s32.totalorder %s428_s30, %s3947_s21  ;;  %p3956_p4 = scmp.lt.s32.totalorder %s3947_s21, %s3947_s21 }
  0x59   : > { %p3950_p3 = pnand %p3948_p0, %p4187_p13  ;;  %p3957_p9 = por %p3956_p4, %p3955_p2 }
  0x5b   : > { %p3951_p1 = pneg %p3950_p3 }
  0x5d   : > { %p3958_p8 = pnand %p3957_p9, %p3951_p1 }
  0x5f   : > { %3961 = shalt.err (!%p3958_p8)
}
  0x60   : > { %3738 = dma.hbm_to_vmem [thread:$0]  (!%p4181_p12), %s4942_s9, 2048, %s428_s30, [#allocation12], %s4992_s22, %s4992_s22, %s4991_s27  }
  0x61   : > { %468 = sbr.rel (%p4173_p10) target bundleno = 1117 (0x45d), region = 72 }
  0x66   : > { %p4993_p13 = scmp.eq.s32.totalorder %s4145_s29, 0 }
  0x68   : > { %4005 = dma.done.wait (%p4993_p13), [#allocation3], 10368   ;;  %p4994_p7 = pmov %p4993_p13 }
  0x6a   : > { %4007 = vsyncadd (%p4994_p7), [#allocation3], 4294956928  ;;  %p4995_p11 = pmov %p4994_p7 }
  0x6b   : > { %p4996_p0 = pmov %p4994_p7 }
  0x6c   : > { %4009 = dma.done.wait (%p4995_p11), [#allocation6], 23040  }
  0x6d   : > { %4011 = vsyncadd (%p4996_p0), [#allocation6], 4294944256  ;;  %p4997_p3 = pmov %p4996_p0 }
  0x6e   : > { %p4998_p12 = pmov %p4996_p0 }
  0x6f   : > { %4013 = dma.done.wait (%p4997_p3), [#allocation9], 3200  }
  0x70   : > { %4015 = vsyncadd (%p4998_p12), [#allocation9], 4294964096  ;;  %p4999_p10 = pmov %p4996_p0 }
  0x71   : > { %p5000_p1 = pmov %p4996_p0 }
  0x72   : > { %4017 = dma.done.wait (%p4999_p10), [#allocation12], 2048  }
  0x73   : > { %4019 = vsyncadd (%p5000_p1), [#allocation12], 4294965248  ;;  %v4050_v0 = vmov 0.0   ;;  %vm4051_vm0 = vmmov 0   ;;  %v4270_v1 = vld [vmem:[#allocation2 + $0xc8] sm:$0xff]  ;;  %v4272_v2 = vld [vmem:[#allocation2 + $0xd0] sm:$0xff] }
  0x74   : > { %3396 = vmatprep.subr.mxu1 %v4050_v0  ;;  %3414 = vmatprep.mubr.msk.f32.mxu1 %vm4051_vm0, %v4050_v0  ;;  %v4274_v3 = vld [vmem:[#allocation2 + $0xc0] sm:$0xff]  ;;  %v4278_v4 = vld [vmem:[#allocation2 + $0xb0] sm:$0xff]  ;;  %v4280_v5 = vld [vmem:[#allocation2 + $0xb8] sm:$0xff]  ;;  %p537_p2 = scmp.lt.s32.totalorder %s4145_s29, 1  ;;  %vm579_vm1 = vcmask 588800   ;;  %vm947_vm2 = vcmask 1046528  }
  0x75   : > { %647 = vmatprep.mubr.f32.mxu0 %v4050_v0  ;;  %597 = vmatprep.subr.mxu0 %v4270_v1  ;;  %v4282_v6 = vld [vmem:[#allocation2 + $0xa8] sm:$0xff]  ;;  %v4287_v7 = vld [vmem:[#allocation2 + $0x98] sm:$0xff]  ;;  %v4289_v8 = vld [vmem:[#allocation2 + $0xa0] sm:$0xff]  ;;  %vm1573_vm3 = vcmask 261120   ;;  %vm2082_vm4 = vcmask 64512   ;;  %s534_s24 = sand.u32 1, %s4030_s26  }
  0x76   : > { %3397 = vmatpush3.msra.mxu1 %v4272_v2  ;;  %598 = vmatpush1.msra.mxu0 %v4274_v3  ;;  %v4293_v9 = vld [vmem:[#allocation2 + $0x90] sm:$0xff]  ;;  %v4297_v10 = vld [vmem:[#allocation2 + $0x80] sm:$0xff]  ;;  %v4299_v11 = vld [vmem:[#allocation2 + $0x88] sm:$0xff]  ;;  %s4308_s17 = scalar_select %p537_p2, %s4145_s29, 1 }
  0x77   : > { %3398 = vmatprep.subr.mxu1 %v4050_v0  ;;  %599 = vmatprep.subr.mxu0 %v4278_v4  ;;  %v4303_v12 = vld [vmem:[#allocation2 + $0x78] sm:$0xff]  ;;  %v4312_v13 = vld [vmem:[#allocation2 + $0x68] sm:$0xff]  ;;  %v4314_v14 = vld [vmem:[#allocation2 + $0x70] sm:$0xff]  ;;  %s3047_s19 = sshll.u32 %s534_s24, 3  ;;  %s3075_s25 = sshll.u32 %s4145_s29, 7 }
  0x78   : > { %3399 = vmatpush3.msra.mxu1 %v4280_v5  ;;  %600 = vmatpush1.msra.mxu0 %v4282_v6  ;;  %v4318_v15 = vld [vmem:[#allocation2 + $0x60] sm:$0xff]  ;;  %v4322_v16 = vld [vmem:[#allocation2 + $0x50] sm:$0xff]  ;;  %v4324_v17 = vld [vmem:[#allocation2 + $0x58] sm:$0xff]  ;;  %s3078_s20 = sshll.u32 %s4308_s17, 4  ;;  %s536_s30 = scalar_lea.vmem [#allocation13], %s3047_s19 }
  0x79   : > { %3400 = vmatprep.subr.mxu1 %v4050_v0  ;;  %601 = vmatprep.subr.mxu0 %v4287_v7  ;;  %v4328_v18 = vld [vmem:[#allocation2 + $0x48] sm:$0xff]  ;;  %v4333_v19 = vld [vmem:[#allocation2 + $0x38] sm:$0xff]  ;;  %v4335_v20 = vld [vmem:[#allocation2 + $0x40] sm:$0xff]  ;;  %s4352_s22 = scalar_lea.vmem %s4933_s0, %s3078_s20  ;;  %s4456_s3 = scalar_lea.vmem %s4934_s1, %s3078_s20 }
  0x7a   : > { %3401 = vmatpush3.msra.mxu1 %v4289_v8  ;;  %602 = vmatpush1.msra.mxu0 %v4293_v9  ;;  %v4339_v21 = vld [vmem:[#allocation2 + $0x30] sm:$0xff]  ;;  %v4343_v22 = vld [vmem:[#allocation2 + $0x20] sm:$0xff]  ;;  %v4345_v23 = vld [vmem:[#allocation2 + $0x28] sm:$0xff]  ;;  %s2900_s21 = sshll.u32 %s536_s30, 4  ;;  %s2898_s17 = scalar_lea.hbm %s4946_s13, %s3075_s25  ;;  %s2901_s21 = int_to_ptr.vmem [resolvable:$true] %s2900_s21 }
  0x7b   : > { %3402 = vmatprep.subr.mxu1 %v4050_v0  ;;  %603 = vmatprep.subr.mxu0 %v4297_v10  ;;  %v4356_v24 = vld [vmem:[#allocation2 + $0x18] sm:$0xff]  ;;  %v4360_v25 = vld [vmem:[#allocation2 + $0x8] sm:$0xff]  ;;  %v4362_v26 = vld [vmem:[#allocation2 + $0x10] sm:$0xff]  ;;  %s2887_s20 = scalar_lea.sflag [#allocation4], %s534_s24  ;;  %s3962_s23 = scalar_lea.vmem %s2901_s21, 128 }
  0x7c   : > { %3403 = vmatpush3.msra.mxu1 %v4299_v11  ;;  %604 = vmatpush1.msra.mxu0 %v4303_v12  ;;  %v4366_v27 = vld [vmem:[#allocation2] sm:$0xff]  ;;  %v4377_v30 = vld [vmem:[#allocation2 + $0x1a8] sm:$0xff]  ;;  %v4382_v31 = vld [vmem:[#allocation2 + $0x198] sm:$0xff]  ;;  %p3963_p4 = scmp.ne.s32.totalorder %s2901_s21, %s3962_s23  ;;  %s4053_s27 = smov [#allocation13]  }
  0x7d   : > { %3404 = vmatprep.subr.mxu1 %v4050_v0  ;;  %605 = vmatprep.subr.mxu0 %v4312_v13  ;;  %v4369_v28 = vld [vmem:[%s4352_s22] sm:$0xff]  ;;  %v4386_v32 = vld [vmem:[#allocation2 + $0x188] sm:$0xff]  ;;  %v4388_v33 = vld [vmem:[#allocation2 + $0x190] sm:$0xff] }
  0x7e   : > { %3405 = vmatpush3.msra.mxu1 %v4314_v14  ;;  %606 = vmatpush1.msra.mxu0 %v4318_v15  ;;  %v4373_v29 = vld [vmem:[#allocation2 + $0x1a0] sm:$0xff]  ;;  %v4397_v35 = vld [vmem:[#allocation2 + $0x170] sm:$0xff]  ;;  %v4399_v36 = vld [vmem:[#allocation2 + $0x178] sm:$0xff]  ;;  %p3964_p9 = pnand %p3963_p4, %p4162_p5 }
  0x7f   : > { %3406 = vmatprep.subr.mxu1 %v4050_v0  ;;  %607 = vmatprep.subr.mxu0 %v4322_v16  ;;  %v4393_v34 = vld [vmem:[#allocation2 + $0x180] sm:$0xff]  ;;  %v4403_v37 = vld [vmem:[#allocation2 + $0x168] sm:$0xff]  ;;  %v4407_v38 = vld [vmem:[#allocation2 + $0x158] sm:$0xff] }
  0x80   : > { %3407 = vmatpush3.msra.mxu1 %v4324_v17  ;;  %608 = vmatpush1.msra.mxu0 %v4328_v18  ;;  %v4409_v39 = vld [vmem:[#allocation2 + $0x160] sm:$0xff]  ;;  %v4413_v40 = vld [vmem:[#allocation2 + $0x150] sm:$0xff]  ;;  %v4419_v42 = vld [vmem:[#allocation2 + $0x148] sm:$0xff]  ;;  %p3965_p8 = pneg %p3964_p9 }
  0x81   : > { %3408 = vmatprep.subr.mxu1 %v4050_v0  ;;  %609 = vmatprep.subr.mxu0 %v4333_v19  ;;  %v4417_v41 = vld [vmem:[#allocation2 + $0x140] sm:$0xff]  ;;  %v4423_v43 = vld [vmem:[#allocation2 + $0x138] sm:$0xff]  ;;  %v4427_v44 = vld [vmem:[#allocation2 + $0x128] sm:$0xff] }
  0x82   : > { %3409 = vmatpush3.msra.mxu1 %v4335_v20  ;;  %610 = vmatpush1.msra.mxu0 %v4339_v21  ;;  %v4429_v45 = vld [vmem:[#allocation2 + $0x130] sm:$0xff]  ;;  %v4433_v46 = vld [vmem:[#allocation2 + $0x120] sm:$0xff]  ;;  %v4439_v48 = vld [vmem:[#allocation2 + $0x118] sm:$0xff] }
  0x83   : > { %3410 = vmatprep.subr.mxu1 %v4050_v0  ;;  %611 = vmatprep.subr.mxu0 %v4343_v22  ;;  %v4437_v47 = vld [vmem:[#allocation2 + $0x110] sm:$0xff]  ;;  %v4443_v49 = vld [vmem:[#allocation2 + $0x108] sm:$0xff]  ;;  %v4447_v50 = vld [vmem:[#allocation2 + $0xf8] sm:$0xff] }
  0x84   : > { %3411 = vmatpush3.msra.mxu1 %v4345_v23  ;;  %612 = vmatpush1.msra.mxu0 %v4356_v24  ;;  %v4449_v51 = vld [vmem:[#allocation2 + $0x100] sm:$0xff]  ;;  %v4460_v52 = vld [vmem:[#allocation2 + $0xf0] sm:$0xff]  ;;  %v4466_v54 = vld [vmem:[#allocation2 + $0xe8] sm:$0xff] }
  0x85   : > { %3412 = vmatprep.subr.mxu1 %v4050_v0  ;;  %613 = vmatprep.subr.mxu0 %v4360_v25  ;;  %5001 = vst [vmem:[#allocation24_spill] sm:$0xff] %v4460_v52  ;;  %v4464_v53 = vld [vmem:[#allocation2 + $0xe0] sm:$0xff]  ;;  %5003 = vst [vmem:[#allocation26_spill] sm:$0xff] %v4466_v54  ;;  %v4470_v55 = vld [vmem:[#allocation2 + $0xd8] sm:$0xff] }
  0x86   : > { %3413 = vmatpush3.msra.mxu1 %v4362_v26  ;;  %614 = vmatpush1.msra.mxu0 %v4366_v27  ;;  %5002 = vst [vmem:[#allocation25_spill] sm:$0xff] %v4464_v53  ;;  %5004 = vst [vmem:[#allocation27_spill] sm:$0xff] %v4470_v55  ;;  %v4473_v56 = vld [vmem:[%s4456_s3] sm:$0xff]  ;;  %v4479_v57 = vld [vmem:[#allocation2 + $0x278] sm:$0xff] }
  0x87   : > { %3415 = vmatmul.mubr.msk.f32.vlgmr.msra.gmra.mxu1 %vm579_vm1, %v4369_v28  ;;  %3417 = vmatprep.subr.mxu1 %v4050_v0  ;;  %5005 = vst [vmem:[#allocation28_spill] sm:$0xff] %v4479_v57  ;;  %v4484_v58 = vld [vmem:[#allocation2 + $0x280] sm:$0xff]  ;;  %v4489_v59 = vld [vmem:[#allocation2 + $0x270] sm:$0xff]  ;;  %v4495_v61 = vld [vmem:[#allocation2 + $0x268] sm:$0xff] }
  0x88   : > { %788 = vmatprep.subr.mxu0 %v4373_v29  ;;  %3418 = vmatpush3.msra.mxu1 %v4377_v30  ;;  %5006 = vst [vmem:[#allocation29_spill] sm:$0xff] %v4484_v58  ;;  %5007 = vst [vmem:[#allocation30_spill] sm:$0xff] %v4489_v59  ;;  %v4493_v60 = vld [vmem:[#allocation2 + $0x260] sm:$0xff]  ;;  %v4500_v62 = vld [vmem:[#allocation2 + $0x258] sm:$0xff] }
  0x89   : > { %3052 = vmatmul.mubr.msk.f32.vlgmr.msra.gmra.mxu0 %vm579_vm1, %v4369_v28  ;;  %3419 = vmatprep.subr.mxu1 %v4050_v0  ;;  %5008 = vst [vmem:[#allocation31_spill] sm:$0xff] %v4493_v60  ;;  %5009 = vst [vmem:[#allocation32_spill] sm:$0xff] %v4495_v61  ;;  %v4504_v63 = vld [vmem:[#allocation2 + $0x248] sm:$0xff] }
  0x8a   : > { %789 = vmatpush1.msra.mxu0 %v4382_v31  ;;  %3420 = vmatpush3.msra.mxu1 %v4388_v33  ;;  %5010 = vst [vmem:[#allocation33_spill] sm:$0xff] %v4500_v62  ;;  %5011 = vst [vmem:[#allocation34_spill] sm:$0xff] %v4504_v63 }
  0x8b   : > { %790 = vmatprep.subr.mxu0 %v4386_v32  ;;  %3421 = vmatprep.subr.mxu1 %v4050_v0 }
  0x8c   : > { %791 = vmatpush1.msra.mxu0 %v4393_v34  ;;  %3422 = vmatpush3.msra.mxu1 %v4399_v36 }
  0x8d   : > { %792 = vmatprep.subr.mxu0 %v4397_v35  ;;  %3423 = vmatprep.subr.mxu1 %v4050_v0 }
  0x8e   : > { %793 = vmatpush1.msra.mxu0 %v4403_v37  ;;  %3424 = vmatpush3.msra.mxu1 %v4409_v39 }
  0x8f   : > { %794 = vmatprep.subr.mxu0 %v4407_v38  ;;  %3425 = vmatprep.subr.mxu1 %v4050_v0 }
  0x90   : > { %795 = vmatpush1.msra.mxu0 %v4413_v40  ;;  %3426 = vmatpush3.msra.mxu1 %v4419_v42 }
  0x91   : > { %796 = vmatprep.subr.mxu0 %v4417_v41  ;;  %3427 = vmatprep.subr.mxu1 %v4050_v0 }
  0x92   : > { %797 = vmatpush1.msra.mxu0 %v4423_v43  ;;  %3428 = vmatpush3.msra.mxu1 %v4429_v45 }
  0x93   : > { %798 = vmatprep.subr.mxu0 %v4427_v44  ;;  %3429 = vmatprep.subr.mxu1 %v4050_v0 }
  0x94   : > { %799 = vmatpush1.msra.mxu0 %v4433_v46  ;;  %3430 = vmatpush3.msra.mxu1 %v4439_v48 }
  0x95   : > { %800 = vmatprep.subr.mxu0 %v4437_v47  ;;  %3431 = vmatprep.subr.mxu1 %v4050_v0 }
  0x96   : > { %801 = vmatpush1.msra.mxu0 %v4443_v49  ;;  %3432 = vmatpush3.msra.mxu1 %v4449_v51 }
  0x97   : > { %802 = vmatprep.subr.mxu0 %v4447_v50  ;;  %3433 = vmatprep.subr.mxu1 %v4050_v0 }
  0x98   : > { %803 = vmatpush1.msra.mxu0 %v4460_v52  ;;  %3434 = vmatpush3.msra.mxu1 %v4466_v54  ;;  %v4520_v54 = vld [vmem:[#allocation2 + $0x228] sm:$0xff] }
  0x99   : > { %804 = vmatprep.subr.mxu0 %v4464_v53  ;;  %3435 = vmatprep.mubr.msk.f32.mxu1 %vm4051_vm0, %v4050_v0  ;;  %5016 = vst [vmem:[#allocation39_spill] sm:$0xff] %v4520_v54  ;;  %v4541_v53 = vld [vmem:[#allocation2 + $0x1f8] sm:$0xff] }
  0x9a   : > { %805 = vmatpush1.msra.mxu0 %v4470_v55  ;;  %3436 = vmatmul.mubr.msk.f32.vlgmr.msra.gmra.mxu1 %vm579_vm1, %v4473_v56  ;;  %v4506_v55 = vld [vmem:[#allocation2 + $0x250] sm:$0xff]  ;;  %5021 = vst [vmem:[#allocation44_spill] sm:$0xff] %v4541_v53 }
  0x9b   : > { %3438 = vmatprep.subr.mxu1 %v4050_v0  ;;  %838 = vmatprep.mubr.f32.mxu0 %v4050_v0  ;;  %5012 = vst [vmem:[#allocation35_spill] sm:$0xff] %v4506_v55 }
  0x9c   : > { %967 = vmatprep.subr.mxu0 %v4479_v57  ;;  %3439 = vmatpush3.msra.mxu1 %v4484_v58  ;;  %v4510_v57 = vld [vmem:[#allocation2 + $0x240] sm:$0xff]  ;;  %v4514_v58 = vld [vmem:[#allocation2 + $0x230] sm:$0xff] }
  0x9d   : > { %3054 = vmatmul.mubr.msk.f32.vlgmr.msra.gmra.mxu0 %vm579_vm1, %v4473_v56  ;;  %3440 = vmatprep.subr.mxu1 %v4050_v0  ;;  %5013 = vst [vmem:[#allocation36_spill] sm:$0xff] %v4510_v57  ;;  %5014 = vst [vmem:[#allocation37_spill] sm:$0xff] %v4514_v58 }
  0x9e   : > { %968 = vmatpush1.msra.mxu0 %v4489_v59  ;;  %3441 = vmatpush3.msra.mxu1 %v4495_v61  ;;  %v4516_v59 = vld [vmem:[#allocation2 + $0x238] sm:$0xff] }
  0x9f   : > { %969 = vmatprep.subr.mxu0 %v4493_v60  ;;  %3442 = vmatprep.subr.mxu1 %v4050_v0  ;;  %5015 = vst [vmem:[#allocation38_spill] sm:$0xff] %v4516_v59  ;;  %v4524_v61 = vld [vmem:[#allocation2 + $0x218] sm:$0xff]  ;;  %v4530_v60 = vld [vmem:[#allocation2 + $0x210] sm:$0xff] }
  0xa0   : > { %970 = vmatpush1.msra.mxu0 %v4500_v62  ;;  %3443 = vmatpush3.msra.mxu1 %v4506_v55  ;;  %5017 = vst [vmem:[#allocation40_spill] sm:$0xff] %v4524_v61  ;;  %v4526_v62 = vld [vmem:[#allocation2 + $0x220] sm:$0xff]  ;;  %5019 = vst [vmem:[#allocation42_spill] sm:$0xff] %v4530_v60 }
  0xa1   : > { %971 = vmatprep.subr.mxu0 %v4504_v63  ;;  %3444 = vmatprep.subr.mxu1 %v4050_v0  ;;  %5018 = vst [vmem:[#allocation41_spill] sm:$0xff] %v4526_v62  ;;  %v4534_v55 = vld [vmem:[#allocation2 + $0x200] sm:$0xff]  ;;  %v4536_v63 = vld [vmem:[#allocation2 + $0x208] sm:$0xff] }
  0xa2   : > { %972 = vmatpush1.msra.mxu0 %v4510_v57  ;;  %3445 = vmatpush3.msra.mxu1 %v4516_v59  ;;  %5020 = vst [vmem:[#allocation43_spill] sm:$0xff] %v4534_v55  ;;  %v548_v57 = vld [vmem:[%s4352_s22 + $0x8] sm:$0x1]  ;;  %s3966_s22 = sshll.u32 %s4053_s27, 4  ;;  %s3967_s22 = int_to_ptr.vmem [resolvable:$false] %s3966_s22 }
  0xa3   : > { %973 = vmatprep.subr.mxu0 %v4514_v58  ;;  %3446 = vmatprep.subr.mxu1 %v4050_v0  ;;  %v4545_v59 = vld [vmem:[#allocation2 + $0x1e8] sm:$0xff]  ;;  %v4551_v58 = vld [vmem:[#allocation2 + $0x1e0] sm:$0xff]  ;;  %v949_v52 = vrot.slane %v548_v57, 1  ;;  %s3968_s29 = scalar_lea.vmem %s3967_s22, 256  ;;  %p3969_p13 = scmp.lt.s32.totalorder %s2901_s21, %s3967_s22 }
  0xa4   : > { %974 = vmatpush1.msra.mxu0 %v4520_v54  ;;  %3447 = vmatpush3.msra.mxu1 %v4526_v62  ;;  %v4547_v54 = vld [vmem:[#allocation2 + $0x1f0] sm:$0xff]  ;;  %v4558_v62 = vld [vmem:[#allocation2 + $0x1d8] sm:$0xff]  ;;  %v4568_v57 = vld [vmem:[#allocation2 + $0x1c0] sm:$0xff]  ;;  %p3970_p7 = scmp.lt.s32.totalorder %s3968_s29, %s3962_s23 }
  0xa5   : > { %975 = vmatprep.subr.mxu0 %v4524_v61  ;;  %3448 = vmatprep.subr.mxu1 %v4050_v0  ;;  %5022 = vst [vmem:[#allocation45_spill] sm:$0xff] %v4547_v54  ;;  %v948_v61 = vrot.slane %v4369_v28, 1  ;;  %v4566_v28 = vld [vmem:[#allocation2 + $0x1b8] sm:$0xff] }
  0xa6   : > { %976 = vmatpush1.msra.mxu0 %v4530_v60  ;;  %3449 = vmatpush3.msra.mxu1 %v4536_v63  ;;  %v4556_v60 = vld [vmem:[#allocation2 + $0x1d0] sm:$0xff]  ;;  %p3971_p11 = por %p3970_p7, %p3969_p13 }
  0xa7   : > { %977 = vmatprep.subr.mxu0 %v4534_v55  ;;  %3450 = vmatprep.subr.mxu1 %v4050_v0  ;;  %v4562_v55 = vld [vmem:[#allocation2 + $0x1c8] sm:$0xff] }
  0xa8   : > { %978 = vmatpush1.msra.mxu0 %v4541_v53  ;;  %3451 = vmatpush3.msra.mxu1 %v4547_v54  ;;  %v4572_v53 = vld [vmem:[#allocation2 + $0x1b0] sm:$0xff]  ;;  %v4577_v54 = vsel %vm947_vm2, %v948_v61, %v949_v52  ;;  %v1556_v52 = vld [vmem:[#allocation5 + $0x1b8] sm:$0xff]  ;;  %v1755_v61 = vld [vmem:[#allocation5 + $0x330] sm:$0xff]  ;;  %p3972_p0 = pnand %p3971_p11, %p3965_p8 }
  0xa9   : > { %979 = vmatprep.subr.mxu0 %v4545_v59  ;;  %3452 = vmatprep.subr.mxu1 %v4050_v0 }
  0xaa   : > { %980 = vmatpush1.msra.mxu0 %v4551_v58  ;;  %3453 = vmatpush3.msra.mxu1 %v4558_v62 }
  0xab   : > { %981 = vmatprep.subr.mxu0 %v4556_v60  ;;  %3454 = vmatprep.subr.mxu1 %v4050_v0 }
  0xac   : > { %982 = vmatpush1.msra.mxu0 %v4562_v55  ;;  %3455 = vmatpush3.msra.mxu1 %v4568_v57 }
  0xad   : > { %983 = vmatprep.subr.mxu0 %v4566_v28  ;;  %3456 = vmatprep.mubr.msk.f32.mxu1 %vm4051_vm0, %v4050_v0 }
  0xae   : > { %984 = vmatpush1.msra.mxu0 %v4572_v53  ;;  %1017 = vmatprep.mubr.f32.mxu0 %v4050_v0 }
  0xaf   : > { %3457 = vmatmul.mubr.msk.f32.vlgmr.msra.gmra.mxu1 %vm579_vm1, %v4577_v54  ;;  %3459 = vmatprep.subr.mxu1 %v4050_v0 }
  0xb0   : > { %3056 = vmatmul.mubr.msk.f32.vlgmr.msra.gmra.mxu0 %vm579_vm1, %v4577_v54  ;;  %1111 = vmatprep.subr.mxu0 %v4270_v1  ;;  %v5023_v1 = vld [vmem:[#allocation24_spill] sm:$0xff] }
  0xb1   : > { %3460 = vmatpush3.msra.mxu1 %v4272_v2  ;;  %1112 = vmatpush1.msra.mxu0 %v4274_v3  ;;  %v5024_v2 = vld [vmem:[#allocation25_spill] sm:$0xff]  ;;  %v5025_v3 = vld [vmem:[#allocation26_spill] sm:$0xff] }
  0xb2   : > { %3461 = vmatprep.subr.mxu1 %v4050_v0  ;;  %1113 = vmatprep.subr.mxu0 %v4278_v4  ;;  %v5026_v4 = vld [vmem:[#allocation27_spill] sm:$0xff] }
  0xb3   : > { %3462 = vmatpush3.msra.mxu1 %v4280_v5  ;;  %1114 = vmatpush1.msra.mxu0 %v4282_v6  ;;  %v5027_v5 = vld [vmem:[#allocation28_spill] sm:$0xff]  ;;  %v5028_v6 = vld [vmem:[#allocation29_spill] sm:$0xff] }
  0xb4   : > { %3463 = vmatprep.subr.mxu1 %v4050_v0  ;;  %1115 = vmatprep.subr.mxu0 %v4287_v7  ;;  %v5029_v7 = vld [vmem:[#allocation30_spill] sm:$0xff] }
  0xb5   : > { %3464 = vmatpush3.msra.mxu1 %v4289_v8  ;;  %1116 = vmatpush1.msra.mxu0 %v4293_v9  ;;  %v5030_v8 = vld [vmem:[#allocation31_spill] sm:$0xff]  ;;  %v5031_v9 = vld [vmem:[#allocation32_spill] sm:$0xff] }
  0xb6   : > { %3465 = vmatprep.subr.mxu1 %v4050_v0  ;;  %1117 = vmatprep.subr.mxu0 %v4297_v10  ;;  %v5032_v10 = vld [vmem:[#allocation33_spill] sm:$0xff] }
  0xb7   : > { %3466 = vmatpush3.msra.mxu1 %v4299_v11  ;;  %1118 = vmatpush1.msra.mxu0 %v4303_v12  ;;  %v5033_v11 = vld [vmem:[#allocation34_spill] sm:$0xff]  ;;  %v5034_v12 = vld [vmem:[#allocation35_spill] sm:$0xff] }
  0xb8   : > { %3467 = vmatprep.subr.mxu1 %v4050_v0  ;;  %1119 = vmatprep.subr.mxu0 %v4312_v13  ;;  %v5035_v13 = vld [vmem:[#allocation36_spill] sm:$0xff] }
  0xb9   : > { %3468 = vmatpush3.msra.mxu1 %v4314_v14  ;;  %1120 = vmatpush1.msra.mxu0 %v4318_v15  ;;  %v5036_v14 = vld [vmem:[#allocation37_spill] sm:$0xff]  ;;  %v5037_v15 = vld [vmem:[#allocation38_spill] sm:$0xff] }
  0xba   : > { %3469 = vmatprep.subr.mxu1 %v4050_v0  ;;  %1121 = vmatprep.subr.mxu0 %v4322_v16  ;;  %v5038_v16 = vld [vmem:[#allocation39_spill] sm:$0xff] }
  0xbb   : > { %3470 = vmatpush3.msra.mxu1 %v4324_v17  ;;  %1122 = vmatpush1.msra.mxu0 %v4328_v18  ;;  %v550_v17 = vld [vmem:[%s4456_s3 + $0x8] sm:$0x1]  ;;  %v5039_v18 = vld [vmem:[#allocation40_spill] sm:$0xff] }
  0xbc   : > { %3471 = vmatprep.subr.mxu1 %v4050_v0  ;;  %1123 = vmatprep.subr.mxu0 %v4333_v19  ;;  %v5040_v19 = vld [vmem:[#allocation41_spill] sm:$0xff] }
  0xbd   : > { %3472 = vmatpush3.msra.mxu1 %v4335_v20  ;;  %1124 = vmatpush1.msra.mxu0 %v4339_v21  ;;  %v5041_v20 = vld [vmem:[#allocation42_spill] sm:$0xff]  ;;  %v5042_v21 = vld [vmem:[#allocation43_spill] sm:$0xff] }
  0xbe   : > { %3473 = vmatprep.subr.mxu1 %v4050_v0  ;;  %1125 = vmatprep.subr.mxu0 %v4343_v22  ;;  %v1387_v22 = vrot.slane %v550_v17, 1  ;;  %v1746_v17 = vld [vmem:[#allocation5 + $0x2e8] sm:$0xff] }
  0xbf   : > { %3474 = vmatpush3.msra.mxu1 %v4345_v23  ;;  %1126 = vmatpush1.msra.mxu0 %v4356_v24  ;;  %v5043_v23 = vld [vmem:[#allocation44_spill] sm:$0xff]  ;;  %v1386_v24 = vrot.slane %v4473_v56, 1 }
  0xc0   : > { %3475 = vmatprep.subr.mxu1 %v4050_v0  ;;  %1127 = vmatprep.subr.mxu0 %v4360_v25  ;;  %v5044_v25 = vld [vmem:[#allocation45_spill] sm:$0xff] }
  0xc1   : > { %3476 = vmatpush3.msra.mxu1 %v4362_v26  ;;  %3477 = vmatprep.mubr.msk.f32.mxu1 %vm4051_vm0, %v4050_v0  ;;  %v1388_v26 = vsel %vm947_vm2, %v1386_v24, %v1387_v22  ;;  %v1728_v22 = vld [vmem:[#allocation5 + $0x258] sm:$0xff]  ;;  %v1727_v24 = vld [vmem:[#allocation5 + $0x250] sm:$0xff] }
  0xc2   : > { %1128 = vmatpush1.msra.mxu0 %v4366_v27  ;;  %3478 = vmatmul.mubr.msk.f32.vlgmr.msra.gmra.mxu1 %vm579_vm1, %v4473_v56  ;;  %v1568_v27 = vld [vmem:[#allocation5 + $0x218] sm:$0xff] }
  0xc3   : > { %3480 = vmatprep.subr.mxu1 %v4050_v0  ;;  %1161 = vmatprep.mubr.f32.mxu0 %v4050_v0 }
  0xc4   : > { %1255 = vmatprep.subr.mxu0 %v4373_v29  ;;  %3481 = vmatpush3.msra.mxu1 %v4377_v30  ;;  %v1552_v29 = vld [vmem:[#allocation5 + $0x198] sm:$0xff]  ;;  %v1567_v30 = vld [vmem:[#allocation5 + $0x210] sm:$0xff] }
  0xc5   : > { %3058 = vmatmul.mubr.msk.f32.vlgmr.msra.gmra.mxu0 %vm579_vm1, %v4473_v56  ;;  %3482 = vmatprep.subr.mxu1 %v4050_v0  ;;  %v1539_v56 = vld [vmem:[#allocation5 + $0x130] sm:$0xff] }
  0xc6   : > { %1256 = vmatpush1.msra.mxu0 %v4382_v31  ;;  %3483 = vmatpush3.msra.mxu1 %v4388_v33  ;;  %v1551_v31 = vld [vmem:[#allocation5 + $0x190] sm:$0xff]  ;;  %v1550_v33 = vld [vmem:[#allocation5 + $0x188] sm:$0xff] }
  0xc7   : > { %1257 = vmatprep.subr.mxu0 %v4386_v32  ;;  %3484 = vmatprep.subr.mxu1 %v4050_v0  ;;  %v1566_v32 = vld [vmem:[#allocation5 + $0x208] sm:$0xff] }
  0xc8   : > { %1258 = vmatpush1.msra.mxu0 %v4393_v34  ;;  %3485 = vmatpush3.msra.mxu1 %v4399_v36  ;;  %v1565_v34 = vld [vmem:[#allocation5 + $0x200] sm:$0xff]  ;;  %v1564_v36 = vld [vmem:[#allocation5 + $0x1f8] sm:$0xff] }
  0xc9   : > { %1259 = vmatprep.subr.mxu0 %v4397_v35  ;;  %3486 = vmatprep.subr.mxu1 %v4050_v0  ;;  %v1549_v35 = vld [vmem:[#allocation5 + $0x180] sm:$0xff] }
  0xca   : > { %1260 = vmatpush1.msra.mxu0 %v4403_v37  ;;  %3487 = vmatpush3.msra.mxu1 %v4409_v39  ;;  %v1548_v37 = vld [vmem:[#allocation5 + $0x178] sm:$0xff]  ;;  %v1547_v39 = vld [vmem:[#allocation5 + $0x170] sm:$0xff] }
  0xcb   : > { %1261 = vmatprep.subr.mxu0 %v4407_v38  ;;  %3488 = vmatprep.subr.mxu1 %v4050_v0  ;;  %v1563_v38 = vld [vmem:[#allocation5 + $0x1f0] sm:$0xff] }
  0xcc   : > { %1262 = vmatpush1.msra.mxu0 %v4413_v40  ;;  %3489 = vmatpush3.msra.mxu1 %v4419_v42  ;;  %v1562_v40 = vld [vmem:[#allocation5 + $0x1e8] sm:$0xff]  ;;  %v1561_v42 = vld [vmem:[#allocation5 + $0x1e0] sm:$0xff] }
  0xcd   : > { %1263 = vmatprep.subr.mxu0 %v4417_v41  ;;  %3490 = vmatprep.subr.mxu1 %v4050_v0  ;;  %v1546_v41 = vld [vmem:[#allocation5 + $0x168] sm:$0xff] }
  0xce   : > { %1264 = vmatpush1.msra.mxu0 %v4423_v43  ;;  %3491 = vmatpush3.msra.mxu1 %v4429_v45  ;;  %v1545_v43 = vld [vmem:[#allocation5 + $0x160] sm:$0xff]  ;;  %v1544_v45 = vld [vmem:[#allocation5 + $0x158] sm:$0xff] }
  0xcf   : > { %1265 = vmatprep.subr.mxu0 %v4427_v44  ;;  %3492 = vmatprep.subr.mxu1 %v4050_v0  ;;  %v1560_v44 = vld [vmem:[#allocation5 + $0x1d8] sm:$0xff] }
  0xd0   : > { %1266 = vmatpush1.msra.mxu0 %v4433_v46  ;;  %3493 = vmatpush3.msra.mxu1 %v4439_v48  ;;  %v1559_v46 = vld [vmem:[#allocation5 + $0x1d0] sm:$0xff]  ;;  %v1558_v48 = vld [vmem:[#allocation5 + $0x1c8] sm:$0xff] }
  0xd1   : > { %1267 = vmatprep.subr.mxu0 %v4437_v47  ;;  %3494 = vmatprep.subr.mxu1 %v4050_v0  ;;  %v1543_v47 = vld [vmem:[#allocation5 + $0x150] sm:$0xff] }
  0xd2   : > { %1268 = vmatpush1.msra.mxu0 %v4443_v49  ;;  %3495 = vmatpush3.msra.mxu1 %v4449_v51  ;;  %v1542_v49 = vld [vmem:[#allocation5 + $0x148] sm:$0xff]  ;;  %v1541_v51 = vld [vmem:[#allocation5 + $0x140] sm:$0xff] }
  0xd3   : > { %1269 = vmatprep.subr.mxu0 %v4447_v50  ;;  %3496 = vmatprep.subr.mxu1 %v4050_v0  ;;  %v1557_v50 = vld [vmem:[#allocation5 + $0x1c0] sm:$0xff] }
  0xd4   : > { %1270 = vmatpush1.msra.mxu0 %v5023_v1  ;;  %3497 = vmatpush3.msra.mxu1 %v5025_v3  ;;  %v1537_v1 = vld [vmem:[#allocation5 + $0x120] sm:$0xff] }
  0xd5   : > { %1271 = vmatprep.subr.mxu0 %v5024_v2  ;;  %3498 = vmatprep.mubr.msk.f32.mxu1 %vm4051_vm0, %v4050_v0  ;;  %v1738_v2 = vld [vmem:[#allocation5 + $0x2a8] sm:$0xff]  ;;  %v1753_v3 = vld [vmem:[#allocation5 + $0x320] sm:$0xff] }
  0xd6   : > { %1272 = vmatpush1.msra.mxu0 %v5026_v4  ;;  %3499 = vmatmul.mubr.msk.f32.vlgmr.msra.gmra.mxu1 %vm579_vm1, %v4577_v54  ;;  %v1737_v4 = vld [vmem:[#allocation5 + $0x2a0] sm:$0xff] }
  0xd7   : > { %3501 = vmatprep.subr.mxu1 %v4050_v0  ;;  %1305 = vmatprep.mubr.f32.mxu0 %v4050_v0 }
  0xd8   : > { %1405 = vmatprep.subr.mxu0 %v5027_v5  ;;  %3502 = vmatpush3.msra.mxu1 %v5028_v6  ;;  %v1752_v5 = vld [vmem:[#allocation5 + $0x318] sm:$0xff] }
  0xd9   : > { %3060 = vmatmul.mubr.msk.f32.vlgmr.msra.gmra.mxu0 %vm579_vm1, %v4577_v54  ;;  %3503 = vmatprep.subr.mxu1 %v4050_v0  ;;  %v1736_v6 = vld [vmem:[#allocation5 + $0x298] sm:$0xff] }
  0xda   : > { %1406 = vmatpush1.msra.mxu0 %v5029_v7  ;;  %3504 = vmatpush3.msra.mxu1 %v5031_v9  ;;  %v1751_v7 = vld [vmem:[#allocation5 + $0x310] sm:$0xff]  ;;  %v1750_v9 = vld [vmem:[#allocation5 + $0x308] sm:$0xff] }
  0xdb   : > { %1407 = vmatprep.subr.mxu0 %v5030_v8  ;;  %3505 = vmatprep.subr.mxu1 %v4050_v0  ;;  %v1735_v8 = vld [vmem:[#allocation5 + $0x290] sm:$0xff] }
  0xdc   : > { %1408 = vmatpush1.msra.mxu0 %v5032_v10  ;;  %3506 = vmatpush3.msra.mxu1 %v5034_v12  ;;  %v1734_v10 = vld [vmem:[#allocation5 + $0x288] sm:$0xff]  ;;  %v1733_v12 = vld [vmem:[#allocation5 + $0x280] sm:$0xff] }
  0xdd   : > { %1409 = vmatprep.subr.mxu0 %v5033_v11  ;;  %3507 = vmatprep.subr.mxu1 %v4050_v0  ;;  %v1749_v11 = vld [vmem:[#allocation5 + $0x300] sm:$0xff] }
  0xde   : > { %1410 = vmatpush1.msra.mxu0 %v5035_v13  ;;  %3508 = vmatpush3.msra.mxu1 %v5037_v15  ;;  %v1748_v13 = vld [vmem:[#allocation5 + $0x2f8] sm:$0xff]  ;;  %v1747_v15 = vld [vmem:[#allocation5 + $0x2f0] sm:$0xff] }
  0xdf   : > { %1411 = vmatprep.subr.mxu0 %v5036_v14  ;;  %3509 = vmatprep.subr.mxu1 %v4050_v0  ;;  %v1732_v14 = vld [vmem:[#allocation5 + $0x278] sm:$0xff] }
  0xe0   : > { %1412 = vmatpush1.msra.mxu0 %v5038_v16  ;;  %3510 = vmatpush3.msra.mxu1 %v5040_v19  ;;  %v1731_v16 = vld [vmem:[#allocation5 + $0x270] sm:$0xff]  ;;  %v1745_v19 = vld [vmem:[#allocation5 + $0x2e0] sm:$0xff] }
  0xe1   : > { %1413 = vmatprep.subr.mxu0 %v5039_v18  ;;  %3511 = vmatprep.subr.mxu1 %v4050_v0  ;;  %v1730_v18 = vld [vmem:[#allocation5 + $0x268] sm:$0xff] }
  0xe2   : > { %1414 = vmatpush1.msra.mxu0 %v5041_v20  ;;  %3512 = vmatpush3.msra.mxu1 %v4536_v63  ;;  %v1739_v63 = vld [vmem:[#allocation5 + $0x2b0] sm:$0xff]  ;;  %v1729_v20 = vld [vmem:[#allocation5 + $0x260] sm:$0xff] }
  0xe3   : > { %1415 = vmatprep.subr.mxu0 %v5042_v21  ;;  %3513 = vmatprep.subr.mxu1 %v4050_v0  ;;  %v1744_v21 = vld [vmem:[#allocation5 + $0x2d8] sm:$0xff] }
  0xe4   : > { %1416 = vmatpush1.msra.mxu0 %v5043_v23  ;;  %3514 = vmatpush3.msra.mxu1 %v5044_v25  ;;  %v1743_v23 = vld [vmem:[#allocation5 + $0x2d0] sm:$0xff]  ;;  %v1742_v25 = vld [vmem:[#allocation5 + $0x2c8] sm:$0xff] }
  0xe5   : > { %1417 = vmatprep.subr.mxu0 %v4545_v59  ;;  %3515 = vmatprep.subr.mxu1 %v4050_v0  ;;  %v1756_v59 = vld [vmem:[#allocation5 + $0x338] sm:$0xff] }
  0xe6   : > { %1418 = vmatpush1.msra.mxu0 %v4551_v58  ;;  %3516 = vmatpush3.msra.mxu1 %v4558_v62  ;;  %v1554_v58 = vld [vmem:[#allocation5 + $0x1a8] sm:$0xff] }
  0xe7   : > { %1419 = vmatprep.subr.mxu0 %v4556_v60  ;;  %3517 = vmatprep.subr.mxu1 %v4050_v0  ;;  %v1740_v60 = vld [vmem:[#allocation5 + $0x2b8] sm:$0xff]  ;;  %v1538_v62 = vld [vmem:[#allocation5 + $0x128] sm:$0xff] }
  0xe8   : > { %1420 = vmatpush1.msra.mxu0 %v4562_v55  ;;  %3518 = vmatpush3.msra.mxu1 %v4568_v57  ;;  %v1555_v55 = vld [vmem:[#allocation5 + $0x1b0] sm:$0xff]  ;;  %v1754_v57 = vld [vmem:[#allocation5 + $0x328] sm:$0xff] }
  0xe9   : > { %1421 = vmatprep.subr.mxu0 %v4566_v28  ;;  %3519 = vmatprep.mubr.msk.f32.mxu1 %vm4051_vm0, %v4050_v0  ;;  %v1553_v28 = vld [vmem:[#allocation5 + $0x1a0] sm:$0xff] }
  0xea   : > { %1422 = vmatpush1.msra.mxu0 %v4572_v53  ;;  %1455 = vmatprep.mubr.f32.mxu0 %v4050_v0  ;;  %v1540_v53 = vld [vmem:[#allocation5 + $0x138] sm:$0xff] }
  0xeb   : > { %3520 = vmatmul.mubr.msk.f32.vlgmr.msra.gmra.mxu1 %vm579_vm1, %v1388_v26  ;;  %3062 = vmatmul.mubr.msk.f32.vlgmr.msra.gmra.mxu0 %vm579_vm1, %v1388_v26  ;;  %v1726_v26 = vld [vmem:[#allocation5 + $0x248] sm:$0xff] }
  0xec   : > { %3140 = vmatprep.subr.mxu0 %v1568_v27  ;;  %3180 = vmatprep.subr.mxu1 %v1756_v59  ;;  %v1741_v27 = vld [vmem:[#allocation5 + $0x2c0] sm:$0xff]  ;;  %v1572_v59 = vld [vmem:[#allocation5 + $0x238] sm:$0xff] }
  0xed   : > { %3141 = vmatpush3.msra.mxu0 %v1552_v29  ;;  %3181 = vmatpush3.msra.mxu1 %v1740_v60  ;;  %v1725_v29 = vld [vmem:[#allocation5 + $0x240] sm:$0xff]  ;;  %v1571_v60 = vld [vmem:[#allocation5 + $0x230] sm:$0xff] }
  0xee   : > { %3142 = vmatprep.subr.mxu0 %v1567_v30  ;;  %3182 = vmatprep.subr.mxu1 %v1755_v61 }
  0xef   : > { %3143 = vmatpush3.msra.mxu0 %v1551_v31  ;;  %3183 = vmatpush3.msra.mxu1 %v1739_v63 }
  0xf0   : > { %3144 = vmatprep.subr.mxu0 %v1566_v32  ;;  %3184 = vmatprep.subr.mxu1 %v1754_v57 }
  0xf1   : > { %3145 = vmatpush3.msra.mxu0 %v1550_v33  ;;  %3185 = vmatpush3.msra.mxu1 %v1738_v2  ;;  %v1759_v2 = vld [vmem:[#allocation5 + $0x350] sm:$0xff] }
  0xf2   : > { %3146 = vmatprep.subr.mxu0 %v1565_v34  ;;  %3186 = vmatprep.subr.mxu1 %v1753_v3  ;;  %v725_v34 = vlaneseq  ;;  %v1758_v3 = vld [vmem:[#allocation5 + $0x348] sm:$0xff] }
  0xf3   : > { %3147 = vmatpush3.msra.mxu0 %v1549_v35  ;;  %3187 = vmatpush3.msra.mxu1 %v1737_v4  ;;  %v1757_v4 = vld [vmem:[#allocation5 + $0x340] sm:$0xff] }
  0xf4   : > { %3148 = vmatprep.subr.mxu0 %v1564_v36  ;;  %3188 = vmatprep.subr.mxu1 %v1752_v5  ;;  %v726_v36 = vshrl.u32 %v725_v34, 7  ;;  %v1941_v34 = vld [vmem:[#allocation5 + $0x118] sm:$0xff] }
  0xf5   : > { %3149 = vmatpush3.msra.mxu0 %v1548_v37  ;;  %3189 = vmatpush3.msra.mxu1 %v1736_v6  ;;  %v1937_v6 = vld [vmem:[#allocation5 + $0xf8] sm:$0xff] }
  0xf6   : > { %3150 = vmatprep.subr.mxu0 %v1563_v38  ;;  %3190 = vmatprep.subr.mxu1 %v1751_v7  ;;  %v731_v37 = vsub.s32 1, %v726_v36  ;;  %v727_v38 = vsub.s32 0, %v726_v36 }
  0xf7   : > { %3151 = vmatpush3.msra.mxu0 %v1547_v39  ;;  %3191 = vmatpush3.msra.mxu1 %v1735_v8 }
  0xf8   : > { %3152 = vmatprep.subr.mxu0 %v1562_v40  ;;  %3192 = vmatprep.subr.mxu1 %v1750_v9  ;;  %v551_v40 = vld [vmem:[%s4943_s10] sm:$0x7] }
  0xf9   : > { %3153 = vmatpush3.msra.mxu0 %v1546_v41  ;;  %3193 = vmatpush3.msra.mxu1 %v1734_v10  ;;  %v732_v41 = vrot.slane %v551_v40, %v731_v37  ;;  %v1940_v37 = vld [vmem:[#allocation5 + $0x110] sm:$0xff] }
  0xfa   : > { %3154 = vmatprep.subr.mxu0 %v1561_v42  ;;  %3194 = vmatprep.subr.mxu1 %v1749_v11  ;;  %v728_v42 = vrot.slane %v551_v40, %v727_v38  ;;  %v1933_v38 = vld [vmem:[#allocation5 + $0xd8] sm:$0xff] }
  0xfb   : > { %3155 = vmatpush3.msra.mxu0 %v1545_v43  ;;  %3195 = vmatpush3.msra.mxu1 %v1733_v12 }
  0xfc   : > { %3156 = vmatprep.subr.mxu0 %v1560_v44  ;;  %3196 = vmatprep.subr.mxu1 %v1748_v13 }
  0xfd   : > { %3157 = vmatpush3.msra.mxu0 %v1544_v45  ;;  %3197 = vmatpush3.msra.mxu1 %v1732_v14 }
  0xfe   : > { %3158 = vmatprep.subr.mxu0 %v1559_v46  ;;  %3198 = vmatprep.subr.mxu1 %v1747_v15 }
  0xff   : > { %3159 = vmatpush3.msra.mxu0 %v1543_v47  ;;  %3199 = vmatpush3.msra.mxu1 %v1731_v16 }
 0x100   : > { %3160 = vmatprep.subr.mxu0 %v1558_v48  ;;  %3200 = vmatprep.subr.mxu1 %v1746_v17  ;;  %v735_v48 = vsub.s32 2, %v726_v36  ;;  %v1918_v36 = vld [vmem:[#allocation5 + $0x60] sm:$0xff] }
 0x101   : > { %3161 = vmatpush3.msra.mxu0 %v1542_v49  ;;  %3201 = vmatpush3.msra.mxu1 %v1730_v18 }
 0x102   : > { %3162 = vmatprep.subr.mxu0 %v1557_v50  ;;  %3202 = vmatprep.subr.mxu1 %v1745_v19 }
 0x103   : > { %3163 = vmatpush3.msra.mxu0 %v1541_v51  ;;  %3203 = vmatpush3.msra.mxu1 %v1729_v20 }
 0x104   : > { %3164 = vmatprep.subr.mxu0 %v1556_v52  ;;  %3204 = vmatprep.subr.mxu1 %v1744_v21 }
 0x105   : > { %3165 = vmatpush3.msra.mxu0 %v1540_v53  ;;  %3205 = vmatpush3.msra.mxu1 %v1728_v22  ;;  %v1921_v22 = vld [vmem:[#allocation5 + $0x78] sm:$0xff] }
 0x106   : > { %3166 = vmatprep.subr.mxu0 %v1555_v55  ;;  %3206 = vmatprep.subr.mxu1 %v1743_v23 }
 0x107   : > { %3167 = vmatpush3.msra.mxu0 %v1539_v56  ;;  %3207 = vmatpush3.msra.mxu1 %v1727_v24  ;;  %v736_v56 = vrot.slane %v551_v40, %v735_v48  ;;  %v1939_v40 = vld [vmem:[#allocation5 + $0x108] sm:$0xff]  ;;  %v1929_v48 = vld [vmem:[#allocation5 + $0xb8] sm:$0xff] }
 0x108   : > { %3168 = vmatprep.subr.mxu0 %v1554_v58  ;;  %3208 = vmatprep.subr.mxu1 %v1742_v25 }
 0x109   : > { %3169 = vmatpush3.msra.mxu0 %v1538_v62  ;;  %3209 = vmatpush3.msra.mxu1 %v1726_v26  ;;  %v1570_v62 = vld [vmem:[#allocation5 + $0x228] sm:$0xff]  ;;  %v1936_v26 = vld [vmem:[#allocation5 + $0xf0] sm:$0xff] }
 0x10a   : > { %3170 = vmatprep.subr.mxu0 %v1553_v28  ;;  %3210 = vmatprep.subr.mxu1 %v1741_v27  ;;  %v1569_v28 = vld [vmem:[#allocation5 + $0x220] sm:$0xff] }
 0x10b   : > { %3171 = vmatpush3.msra.mxu0 %v1537_v1  ;;  %3211 = vmatpush3.msra.mxu1 %v1725_v29  ;;  %v1760_v1 = vld [vmem:[#allocation5 + $0x358] sm:$0xff]  ;;  %v1920_v29 = vld [vmem:[#allocation5 + $0x70] sm:$0xff] }
 0x10c   : > { %3522 = vmatprep.subr.mxu0 %v4050_v0  ;;  %3544 = vmatprep.subr.mxu1 %v4050_v0 }
 0x147   : > { %v720_v30 = vpop.f32.mrf.mxu1 }
 0x148   : > { %v742_v61 = vadd.f32 %v736_v56, %v720_v30 }
 0x149   : > { %v3416_v31 = vpop.f32.mrf.mxu1  ;;  %v649_v35 = vpop.f32.mrf.mxu0 }
 0x14a   : > { %v740_v45 = vadd.f32 %v728_v42, %v649_v35  ;;  %v1934_v35 = vld [vmem:[#allocation5 + $0xe0] sm:$0xff] }
 0x14b   : > { %v651_v39 = vpop.f32.mrf.mxu0 }
 0x14c   : > { %v741_v44 = vadd.f32 %v732_v41, %v651_v39  ;;  %v1917_v39 = vld [vmem:[#allocation5 + $0x58] sm:$0xff] }
 0x15a   : > { %v911_v32 = vpop.f32.mrf.mxu1 }
 0x15b   : > { %v917_v63 = vadd.f32 %v911_v32, %v742_v61  ;;  %v1935_v32 = vld [vmem:[#allocation5 + $0xe8] sm:$0xff]  ;;  %v1924_v61 = vld [vmem:[#allocation5 + $0x90] sm:$0xff] }
 0x15c   : > { %v3437_v33 = vpop.f32.mrf.mxu1 }
 0x15d   : > { %v840_v43 = vpop.f32.mrf.mxu0  ;;  %v1919_v33 = vld [vmem:[#allocation5 + $0x68] sm:$0xff] }
 0x15e   : > { %v915_v52 = vadd.f32 %v840_v43, %v740_v45  ;;  %v1938_v43 = vld [vmem:[#allocation5 + $0x100] sm:$0xff]  ;;  %v1915_v45 = vld [vmem:[#allocation5 + $0x48] sm:$0xff] }
 0x15f   : > { %v842_v46 = vpop.f32.mrf.mxu0 }
 0x160   : > { %v916_v50 = vadd.f32 %v842_v46, %v741_v44  ;;  %v1931_v44 = vld [vmem:[#allocation5 + $0xc8] sm:$0xff]  ;;  %v1930_v46 = vld [vmem:[#allocation5 + $0xc0] sm:$0xff] }
 0x16f   : > { %v1090_v47 = vpop.f32.mrf.mxu1 }
 0x170   : > { %v1019_v49 = vpop.f32.mrf.mxu0  ;;  %v4731_v57 = vadd.f32 %v1090_v47, %v917_v63  ;;  %v1914_v47 = vld [vmem:[#allocation5 + $0x40] sm:$0xff]  ;;  %v1923_v63 = vld [vmem:[#allocation5 + $0x88] sm:$0xff] }
 0x171   : > { %v3458_v51 = vpop.f32.mrf.mxu1  ;;  %v1094_v58 = vadd.f32 %v1019_v49, %v915_v52  ;;  %v1913_v49 = vld [vmem:[#allocation5 + $0x38] sm:$0xff]  ;;  %v1927_v52 = vld [vmem:[#allocation5 + $0xa8] sm:$0xff] }
 0x172   : > { %v1021_v53 = vpop.f32.mrf.mxu0  ;;  %v1912_v51 = vld [vmem:[#allocation5 + $0x30] sm:$0xff] }
 0x173   : > { %v4724_v55 = vadd.f32 %v1021_v53, %v916_v50  ;;  %v1928_v50 = vld [vmem:[#allocation5 + $0xb0] sm:$0xff]  ;;  %v1911_v53 = vld [vmem:[#allocation5 + $0x28] sm:$0xff] }
 0x175   : > { %1641 = vmatprep.mubr.f32.mxu0 %v4724_v55 }
 0x176   : > { %1642 = vmatmul.mubr.f32.vlgmr.msra.gmra.mxu0 %v1094_v58 }
 0x177   : > { %3523 = vmatpush3.msra.mxu0 %v1572_v59  ;;  %3530 = vmatprep.mubr.msk.f32.mxu0 %vm4051_vm0, %v4050_v0  ;;  %v1925_v59 = vld [vmem:[#allocation5 + $0x98] sm:$0xff] }
 0x178   : > { %3524 = vmatprep.subr.mxu0 %v4050_v0 }
 0x179   : > { %3525 = vmatpush3.msra.mxu0 %v1571_v60  ;;  %v1909_v60 = vld [vmem:[#allocation5 + $0x18] sm:$0xff] }
 0x17a   : > { %3526 = vmatprep.subr.mxu0 %v4050_v0 }
 0x17b   : > { %3527 = vmatpush3.msra.mxu0 %v1570_v62  ;;  %v1908_v62 = vld [vmem:[#allocation5 + $0x10] sm:$0xff] }
 0x17c   : > { %3528 = vmatprep.subr.mxu0 %v4050_v0 }
 0x17d   : > { %3529 = vmatpush3.msra.mxu0 %v1569_v28  ;;  %v1907_v28 = vld [vmem:[#allocation5 + $0x8] sm:$0xff] }
 0x17e   : > { %3531 = vmatmul.mubr.msk.f32.vlgmr.msra.gmra.mxu0 %vm1573_vm3, %v4731_v57  ;;  %3533 = vmatprep.subr.mxu0 %v4050_v0 }
 0x17f   : > { %3534 = vmatpush3.msra.mxu0 %v1760_v1  ;;  %3541 = vmatprep.mubr.msk.f32.mxu0 %vm4051_vm0, %v4050_v0  ;;  %v1922_v1 = vld [vmem:[#allocation5 + $0x80] sm:$0xff] }
 0x180   : > { %3535 = vmatprep.subr.mxu0 %v4050_v0 }
 0x181   : > { %3536 = vmatpush3.msra.mxu0 %v1759_v2  ;;  %v1906_v2 = vld [vmem:[#allocation5] sm:$0xff] }
 0x182   : > { %3537 = vmatprep.subr.mxu0 %v4050_v0  ;;  %v1234_v5 = vpop.f32.mrf.mxu1 }
 0x183   : > { %3538 = vmatpush3.msra.mxu0 %v1758_v3  ;;  %v1240_v14 = vadd.f32 %v1234_v5, %v736_v56  ;;  %v1926_v56 = vld [vmem:[#allocation5 + $0xa0] sm:$0xff]  ;;  %v2222_v3 = vld [vmem:[#allocation7 + $0x118] sm:$0xff]  ;;  %v2220_v5 = vld [vmem:[#allocation7 + $0x108] sm:$0xff] }
 0x184   : > { %3539 = vmatprep.subr.mxu0 %v4050_v0  ;;  %v3479_v7 = vpop.f32.mrf.mxu1 }
 0x185   : > { %3540 = vmatpush3.msra.mxu0 %v1757_v4  ;;  %v1163_v10 = vpop.f32.mrf.mxu0  ;;  %v2221_v4 = vld [vmem:[#allocation7 + $0x110] sm:$0xff]  ;;  %v2398_v7 = vld [vmem:[#allocation7 + $0x218] sm:$0xff] }
 0x186   : > { %3220 = vmatprep.subr.mxu0 %v1937_v6  ;;  %v1238_v13 = vadd.f32 %v1163_v10, %v728_v42  ;;  %v1916_v42 = vld [vmem:[#allocation5 + $0x50] sm:$0xff]  ;;  %v2219_v6 = vld [vmem:[#allocation7 + $0x100] sm:$0xff] }
 0x187   : > { %v1165_v11 = vpop.f32.mrf.mxu0 }
 0x188   : > { %v1239_v15 = vadd.f32 %v1165_v11, %v732_v41  ;;  %v1932_v41 = vld [vmem:[#allocation5 + $0xd0] sm:$0xff] }
 0x189   : > { %v2397_v11 = vld [vmem:[#allocation7 + $0x210] sm:$0xff] }
 0x196   : > { %v1378_v8 = vpop.f32.mrf.mxu1 }
 0x197   : > { %v1384_v16 = vadd.f32 %v1378_v8, %v1240_v14  ;;  %v2395_v14 = vld [vmem:[#allocation7 + $0x200] sm:$0xff] }
 0x198   : > { %v3500_v9 = vpop.f32.mrf.mxu1 }
 0x199   : > { %v1307_v12 = vpop.f32.mrf.mxu0  ;;  %v2382_v9 = vld [vmem:[#allocation7 + $0x198] sm:$0xff] }
 0x19a   : > { %v1382_v18 = vadd.f32 %v1307_v12, %v1238_v13  ;;  %v2381_v12 = vld [vmem:[#allocation7 + $0x190] sm:$0xff]  ;;  %v2396_v13 = vld [vmem:[#allocation7 + $0x208] sm:$0xff] }
 0x19b   : > { %v1309_v17 = vpop.f32.mrf.mxu0 }
 0x19c   : > { %v1383_v23 = vadd.f32 %v1309_v17, %v1239_v15  ;;  %v2379_v15 = vld [vmem:[#allocation7 + $0x180] sm:$0xff]  ;;  %v2393_v17 = vld [vmem:[#allocation7 + $0x1f0] sm:$0xff] }
 0x1ab   : > { %v1528_v19 = vpop.f32.mrf.mxu1  ;;  %v1457_v21 = vpop.f32.mrf.mxu0 }
 0x1ac   : > { %v4742_v20 = vadd.f32 %v1528_v19, %v1384_v16  ;;  %v4744_v24 = vadd.f32 %v1457_v21, %v1382_v18  ;;  %v2394_v16 = vld [vmem:[#allocation7 + $0x1f8] sm:$0xff]  ;;  %v2377_v18 = vld [vmem:[#allocation7 + $0x170] sm:$0xff]  ;;  %v2392_v19 = vld [vmem:[#allocation7 + $0x1e8] sm:$0xff] }
 0x1ad   : > { %v3521_v25 = vpop.f32.mrf.mxu1  ;;  %v1459_v27 = vpop.f32.mrf.mxu0  ;;  %v2391_v21 = vld [vmem:[#allocation7 + $0x1e0] sm:$0xff] }
 0x1ae   : > { %3542 = vmatmul.mubr.msk.f32.vlgmr.msra.gmra.mxu0 %vm1573_vm3, %v4742_v20  ;;  %v4749_v30 = vmax.f32 %v1094_v58, %v4744_v24  ;;  %v4751_v31 = vadd.f32 %v1459_v27, %v1383_v23  ;;  %v1910_v58 = vld [vmem:[#allocation5 + $0x20] sm:$0xff]  ;;  %v4774_v8 = vmax.f32 %v4731_v57, %v4742_v20  ;;  %v2380_v57 = vld [vmem:[#allocation7 + $0x188] sm:$0xff]  ;;  %v2390_v23 = vld [vmem:[#allocation7 + $0x1d8] sm:$0xff] }
 0x1af   : > { %3221 = vmatpush3.msra.mxu0 %v1921_v22  ;;  %v2375_v22 = vld [vmem:[#allocation7 + $0x160] sm:$0xff]  ;;  %v2389_v25 = vld [vmem:[#allocation7 + $0x1d0] sm:$0xff]  ;;  %v2388_v27 = vld [vmem:[#allocation7 + $0x1c8] sm:$0xff] }
 0x1b0   : > { %3222 = vmatprep.subr.mxu0 %v1936_v26  ;;  %1828 = vmatprep.mubr.f32.mxu1 %v4751_v31  ;;  %v4779_v10 = vmax.f32 %v4724_v55, %v4751_v31  ;;  %v2378_v55 = vld [vmem:[#allocation7 + $0x178] sm:$0xff]  ;;  %v2373_v26 = vld [vmem:[#allocation7 + $0x150] sm:$0xff] }
 0x1b1   : > { %3223 = vmatpush3.msra.mxu0 %v1920_v29  ;;  %2006 = vmatprep.mubr.f32.mxu0 %v4751_v31  ;;  %v2372_v29 = vld [vmem:[#allocation7 + $0x148] sm:$0xff]  ;;  %v2387_v31 = vld [vmem:[#allocation7 + $0x1c0] sm:$0xff] }
 0x1b2   : > { %3224 = vmatprep.subr.mxu0 %v1935_v32  ;;  %1829 = vmatmul.mubr.f32.vlgmr.msra.gmra.mxu1 %v4744_v24  ;;  %v2371_v32 = vld [vmem:[#allocation7 + $0x140] sm:$0xff] }
 0x1b3   : > { %3225 = vmatpush3.msra.mxu0 %v1919_v33  ;;  %3545 = vmatpush3.msra.mxu1 %v1941_v34  ;;  %v2386_v33 = vld [vmem:[#allocation7 + $0x1b8] sm:$0xff] }
 0x1b4   : > { %3226 = vmatprep.subr.mxu0 %v1934_v35  ;;  %3546 = vmatprep.subr.mxu1 %v4050_v0  ;;  %v2370_v34 = vld [vmem:[#allocation7 + $0x138] sm:$0xff]  ;;  %v2385_v35 = vld [vmem:[#allocation7 + $0x1b0] sm:$0xff] }
 0x1b5   : > { %3227 = vmatpush3.msra.mxu0 %v1918_v36  ;;  %3547 = vmatpush3.msra.mxu1 %v1940_v37  ;;  %v2369_v36 = vld [vmem:[#allocation7 + $0x130] sm:$0xff]  ;;  %v2384_v37 = vld [vmem:[#allocation7 + $0x1a8] sm:$0xff] }
 0x1b6   : > { %3228 = vmatprep.subr.mxu0 %v1933_v38  ;;  %3548 = vmatprep.subr.mxu1 %v4050_v0  ;;  %v2368_v38 = vld [vmem:[#allocation7 + $0x128] sm:$0xff] }
 0x1b7   : > { %3229 = vmatpush3.msra.mxu0 %v1917_v39  ;;  %3549 = vmatpush3.msra.mxu1 %v1939_v40  ;;  %v2383_v39 = vld [vmem:[#allocation7 + $0x1a0] sm:$0xff] }
 0x1b8   : > { %3230 = vmatprep.subr.mxu0 %v1932_v41  ;;  %3550 = vmatprep.subr.mxu1 %v4050_v0  ;;  %v2367_v40 = vld [vmem:[#allocation7 + $0x120] sm:$0xff] }
 0x1b9   : > { %3231 = vmatpush3.msra.mxu0 %v1916_v42  ;;  %3551 = vmatpush3.msra.mxu1 %v1938_v43 }
 0x1ba   : > { %3552 = vmatprep.mubr.msk.f32.mxu1 %vm4051_vm0, %v4050_v0  ;;  %3232 = vmatprep.subr.mxu0 %v1931_v44 }
 0x1bb   : > { %3553 = vmatmul.mubr.msk.f32.vlgmr.msra.gmra.mxu1 %vm1573_vm3, %v4742_v20  ;;  %3233 = vmatpush3.msra.mxu0 %v1915_v45  ;;  %v2376_v20 = vld [vmem:[#allocation7 + $0x168] sm:$0xff] }
 0x1bc   : > { %3555 = vmatprep.subr.mxu1 %v4050_v0  ;;  %3234 = vmatprep.subr.mxu0 %v1930_v46 }
 0x1bd   : > { %3557 = vmatprep.mubr.msk.f32.mxu1 %vm4051_vm0, %v4050_v0  ;;  %3235 = vmatpush3.msra.mxu0 %v1914_v47 }
 0x1be   : > { %3236 = vmatprep.subr.mxu0 %v1929_v48 }
 0x1bf   : > { %3237 = vmatpush3.msra.mxu0 %v1913_v49 }
 0x1c0   : > { %3238 = vmatprep.subr.mxu0 %v1928_v50  ;;  %v3065_v50 = vld [vmem:[%s4944_s11] ss:$0 sm:$0xff] }
 0x1c1   : > { %3239 = vmatpush3.msra.mxu0 %v1912_v51 }
 0x1c2   : > { %3240 = vmatprep.subr.mxu0 %v1927_v52 }
 0x1c3   : > { %3241 = vmatpush3.msra.mxu0 %v1911_v53 }
 0x1c4   : > { %3242 = vmatprep.subr.mxu0 %v1926_v56 }
 0x1c5   : > { %3243 = vmatpush3.msra.mxu0 %v1910_v58 }
 0x1c6   : > { %3244 = vmatprep.subr.mxu0 %v1925_v59 }
 0x1c7   : > { %3245 = vmatpush3.msra.mxu0 %v1909_v60 }
 0x1c8   : > { %3246 = vmatprep.subr.mxu0 %v1924_v61 }
 0x1c9   : > { %3247 = vmatpush3.msra.mxu0 %v1908_v62 }
 0x1ca   : > { %3248 = vmatprep.subr.mxu0 %v1923_v63 }
 0x1cb   : > { %3249 = vmatpush3.msra.mxu0 %v1907_v28 }
 0x1cc   : > { %3250 = vmatprep.subr.mxu0 %v1922_v1  ;;  %v1905_v1 = vld [vmem:[%s4938_s5] sm:$0xff] }
 0x1cd   : > { %3251 = vmatpush3.msra.mxu0 %v1906_v2  ;;  %v2218_v2 = vld [vmem:[#allocation7 + $0xf8] sm:$0xff] }
 0x1ce   : > { %2007 = vmatmul.mubr.f32.vlgmr.msra.gmra.mxu0 %v4744_v24  ;;  %3560 = vmatprep.subr.mxu0 %v4050_v0  ;;  %v2374_v24 = vld [vmem:[#allocation7 + $0x158] sm:$0xff] }
 0x1cf   : > { %3561 = vmatpush3.msra.mxu0 %v2222_v3  ;;  %3568 = vmatprep.mubr.msk.f32.mxu0 %vm4051_vm0, %v4050_v0  ;;  %v2202_v3 = vld [vmem:[#allocation7 + $0x78] sm:$0xff] }
 0x1d0   : > { %3562 = vmatprep.subr.mxu0 %v4050_v0 }
 0x1d1   : > { %3563 = vmatpush3.msra.mxu0 %v2221_v4  ;;  %v2217_v4 = vld [vmem:[#allocation7 + $0xf0] sm:$0xff] }
 0x1d2   : > { %3564 = vmatprep.subr.mxu0 %v4050_v0 }
 0x1d3   : > { %3565 = vmatpush3.msra.mxu0 %v2220_v5 }
 0x1d4   : > { %3566 = vmatprep.subr.mxu0 %v4050_v0 }
 0x1d5   : > { %3567 = vmatpush3.msra.mxu0 %v2219_v6  ;;  %v2201_v6 = vld [vmem:[#allocation7 + $0x70] sm:$0xff] }
 0x1d6   : > { %3569 = vmatmul.mubr.msk.f32.vlgmr.msra.gmra.mxu0 %vm1573_vm3, %v4774_v8  ;;  %3302 = vmatprep.subr.mxu0 %v2398_v7  ;;  %v2216_v7 = vld [vmem:[#allocation7 + $0xe8] sm:$0xff] }
 0x1d7   : > { %3303 = vmatpush3.msra.mxu0 %v2382_v9  ;;  %2467 = vmatprep.mubr.f32.mxu0 %v4779_v10 }
 0x1d8   : > { %3304 = vmatprep.subr.mxu0 %v2397_v11  ;;  %v2200_v11 = vld [vmem:[#allocation7 + $0x68] sm:$0xff] }
 0x1d9   : > { %3305 = vmatpush3.msra.mxu0 %v2381_v12  ;;  %v2215_v12 = vld [vmem:[#allocation7 + $0xe0] sm:$0xff] }
 0x1da   : > { %3306 = vmatprep.subr.mxu0 %v2396_v13  ;;  %v2199_v13 = vld [vmem:[#allocation7 + $0x60] sm:$0xff] }
 0x1db   : > { %3307 = vmatpush3.msra.mxu0 %v2380_v57  ;;  %v2214_v57 = vld [vmem:[#allocation7 + $0xd8] sm:$0xff] }
 0x1dc   : > { %3308 = vmatprep.subr.mxu0 %v2395_v14  ;;  %v2198_v14 = vld [vmem:[#allocation7 + $0x58] sm:$0xff] }
 0x1dd   : > { %3309 = vmatpush3.msra.mxu0 %v2379_v15  ;;  %v2213_v15 = vld [vmem:[#allocation7 + $0xd0] sm:$0xff] }
 0x1de   : > { %3310 = vmatprep.subr.mxu0 %v2394_v16  ;;  %v2197_v16 = vld [vmem:[#allocation7 + $0x50] sm:$0xff] }
 0x1df   : > { %3311 = vmatpush3.msra.mxu0 %v2378_v55  ;;  %v2212_v55 = vld [vmem:[#allocation7 + $0xc8] sm:$0xff] }
 0x1e0   : > { %3312 = vmatprep.subr.mxu0 %v2393_v17  ;;  %v2211_v17 = vld [vmem:[#allocation7 + $0xc0] sm:$0xff] }
 0x1e1   : > { %3313 = vmatpush3.msra.mxu0 %v2377_v18  ;;  %v2195_v18 = vld [vmem:[#allocation7 + $0x40] sm:$0xff] }
 0x1e2   : > { %3314 = vmatprep.subr.mxu0 %v2392_v19  ;;  %v2210_v19 = vld [vmem:[#allocation7 + $0xb8] sm:$0xff] }
 0x1e3   : > { %3315 = vmatpush3.msra.mxu0 %v2376_v20  ;;  %v2194_v20 = vld [vmem:[#allocation7 + $0x38] sm:$0xff] }
 0x1e4   : > { %3316 = vmatprep.subr.mxu0 %v2391_v21  ;;  %v2209_v21 = vld [vmem:[#allocation7 + $0xb0] sm:$0xff] }
 0x1e5   : > { %3317 = vmatpush3.msra.mxu0 %v2375_v22  ;;  %v2193_v22 = vld [vmem:[#allocation7 + $0x30] sm:$0xff] }
 0x1e6   : > { %3318 = vmatprep.subr.mxu0 %v2390_v23  ;;  %v2208_v23 = vld [vmem:[#allocation7 + $0xa8] sm:$0xff] }
 0x1e7   : > { %3319 = vmatpush3.msra.mxu0 %v2374_v24  ;;  %v2192_v24 = vld [vmem:[#allocation7 + $0x28] sm:$0xff] }
 0x1e8   : > { %3320 = vmatprep.subr.mxu0 %v2389_v25  ;;  %v2207_v25 = vld [vmem:[#allocation7 + $0xa0] sm:$0xff] }
 0x1e9   : > { %3321 = vmatpush3.msra.mxu0 %v2373_v26  ;;  %v2191_v26 = vld [vmem:[#allocation7 + $0x20] sm:$0xff] }
 0x1ea   : > { %3322 = vmatprep.subr.mxu0 %v2388_v27  ;;  %v2206_v27 = vld [vmem:[#allocation7 + $0x98] sm:$0xff] }
 0x1eb   : > { %3323 = vmatpush3.msra.mxu0 %v2372_v29  ;;  %v2190_v29 = vld [vmem:[#allocation7 + $0x18] sm:$0xff] }
 0x1ec   : > { %3324 = vmatprep.subr.mxu0 %v2387_v31  ;;  %v2205_v31 = vld [vmem:[#allocation7 + $0x90] sm:$0xff] }
 0x1ed   : > { %3325 = vmatpush3.msra.mxu0 %v2371_v32  ;;  %v2189_v32 = vld [vmem:[#allocation7 + $0x10] sm:$0xff] }
 0x1ee   : > { %3326 = vmatprep.subr.mxu0 %v2386_v33  ;;  %v2204_v33 = vld [vmem:[#allocation7 + $0x88] sm:$0xff] }
 0x1ef   : > { %3327 = vmatpush3.msra.mxu0 %v2370_v34  ;;  %v2188_v34 = vld [vmem:[#allocation7 + $0x8] sm:$0xff] }
 0x1f0   : > { %3328 = vmatprep.subr.mxu0 %v2385_v35  ;;  %v2203_v35 = vld [vmem:[#allocation7 + $0x80] sm:$0xff] }
 0x1f1   : > { %3329 = vmatpush3.msra.mxu0 %v2369_v36  ;;  %v2187_v36 = vld [vmem:[#allocation7] sm:$0xff] }
 0x1f2   : > { %3330 = vmatprep.subr.mxu0 %v2384_v37  ;;  %v2402_v37 = vld [vmem:[#allocation7 + $0x238] sm:$0xff] }
 0x1f3   : > { %3331 = vmatpush3.msra.mxu0 %v2368_v38  ;;  %v2401_v38 = vld [vmem:[#allocation7 + $0x230] sm:$0xff] }
 0x1f4   : > { %3332 = vmatprep.subr.mxu0 %v2383_v39  ;;  %v2400_v39 = vld [vmem:[#allocation7 + $0x228] sm:$0xff] }
 0x1f5   : > { %3333 = vmatpush3.msra.mxu0 %v2367_v40  ;;  %v2399_v40 = vld [vmem:[#allocation7 + $0x220] sm:$0xff] }
 0x1f6   : > { %2468 = vmatmul.mubr.f32.vlgmr.msra.gmra.mxu0 %v4749_v30  ;;  %3624 = vmatprep.subr.mxu0 %v4050_v0 }
 0x1f7   : > { %3656 = vmatprep.mubr.msk.f32.mxu0 %vm4051_vm0, %v4050_v0 }
 0x236   : > { %v3172_v41 = vpop.f32.mrf.mxu0 }
 0x238   : > { %v3173_v42 = vpop.f32.mrf.mxu0 }
 0x239   : > { %v3174_v43 = vadd.f32 %v3173_v42, %v3172_v41  ;;  %v2552_v41 = vld [vmem:[%s4939_s6 + $0x38] sm:$0xff]  ;;  %v2551_v42 = vld [vmem:[%s4939_s6 + $0x30] sm:$0xff] }
 0x23e   : > { %v1713_v44 = vpop.f32.mrf.mxu0 }
 0x23f   : > { %v1714_v45 = vadd.f32 %v3174_v43, %v1713_v44  ;;  %v2549_v43 = vld [vmem:[%s4939_s6 + $0x20] sm:$0xff]  ;;  %v2548_v44 = vld [vmem:[%s4939_s6 + $0x18] sm:$0xff] }
 0x240   : > { %v3532_v46 = vpop.f32.mrf.mxu0 }
 0x241   : > { %v1723_v53 = vadd.f32 %v3065_v50, %v1714_v45  ;;  %v2547_v45 = vld [vmem:[%s4939_s6 + $0x10] sm:$0xff]  ;;  %v2546_v46 = vld [vmem:[%s4939_s6 + $0x8] sm:$0xff]  ;;  %v2638_v50 = vld [vmem:[#allocation8 + $0x38] sm:$0xff] }
 0x26e   : > { %v1900_v47 = vpop.f32.mrf.mxu0 }
 0x270   : > { %v3543_v48 = vpop.f32.mrf.mxu0 }
 0x271   : > { %v2639_v48 = vld [vmem:[#allocation8 + $0x40] sm:$0xff] }
 0x272   : > { %v3212_v49 = vpop.f32.mrf.mxu1 }
 0x274   : > { %v3213_v51 = vpop.f32.mrf.mxu1 }
 0x275   : > { %v3214_v52 = vadd.f32 %v3213_v51, %v3212_v49  ;;  %v3805_v49 = vld [vmem:[%s4456_s3] sm:$0xff]  ;;  %v2637_v51 = vld [vmem:[#allocation8 + $0x30] sm:$0xff] }
 0x277   : > { %v1901_v56 = vadd.f32 %v3214_v52, %v1900_v47  ;;  %v2545_v47 = vld [vmem:[%s4939_s6] sm:$0xff]  ;;  %v2636_v52 = vld [vmem:[#allocation8 + $0x28] sm:$0xff] }
 0x279   : > { %v4791_v58 = vadd.f32 %v1901_v56, %v1723_v53  ;;  %v2635_v53 = vld [vmem:[#allocation8 + $0x20] sm:$0xff]  ;;  %v2634_v56 = vld [vmem:[#allocation8 + $0x18] sm:$0xff] }
 0x27b   : > { %v2078_v59 = vpop.f32.mrf.mxu1 }
 0x27d   : > { %v3554_v60 = vpop.f32.mrf.mxu1 }
 0x27e   : > { %v2632_v60 = vld [vmem:[#allocation8 + $0x8] sm:$0xff] }
 0x28e   : > { %v3252_v61 = vpop.f32.mrf.mxu0 }
 0x290   : > { %v3253_v62 = vpop.f32.mrf.mxu0 }
 0x291   : > { %v3254_v63 = vadd.f32 %v3253_v62, %v3252_v61  ;;  %v2631_v61 = vld [vmem:[#allocation8] sm:$0xff] }
 0x292   : > { %v2813_v62 = vld [vmem:[#allocation11 + $0x78] sm:$0xff] }
 0x293   : > { %v2079_v28 = vadd.f32 %v3254_v63, %v2078_v59  ;;  %v2633_v59 = vld [vmem:[#allocation8 + $0x10] sm:$0xff]  ;;  %v2812_v63 = vld [vmem:[#allocation11 + $0x70] sm:$0xff] }
 0x295   : > { %3556 = vmatpush3.msra.mxu1 %v2079_v28  ;;  %v2811_v28 = vld [vmem:[#allocation11 + $0x68] sm:$0xff] }
 0x296   : > { %3558 = vmatmul.mubr.msk.f32.vlgmr.msra.gmra.mxu1 %vm2082_vm4, %v1905_v1  ;;  %3262 = vmatprep.subr.mxu1 %v2218_v2  ;;  %v4796_v5 = vpop.f32.mrf.mxu0  ;;  %v2810_v1 = vld [vmem:[#allocation11 + $0x60] sm:$0xff]  ;;  %v2809_v2 = vld [vmem:[#allocation11 + $0x58] sm:$0xff] }
 0x297   : > { %3263 = vmatpush3.msra.mxu1 %v2202_v3  ;;  %2290 = vmatprep.mubr.f32.mxu1 %v4779_v10  ;;  %v2196_v10 = vld [vmem:[#allocation7 + $0x48] sm:$0xff]  ;;  %v2725_v3 = vld [vmem:[#allocation10 + $0x70] sm:$0xff] }
 0x298   : > { %3264 = vmatprep.subr.mxu1 %v2217_v4  ;;  %v3570_v9 = vpop.f32.mrf.mxu0  ;;  %v2808_v4 = vld [vmem:[#allocation11 + $0x50] sm:$0xff] }
 0x299   : > { %3265 = vmatpush3.msra.mxu1 %v2201_v6  ;;  %v2724_v6 = vld [vmem:[#allocation10 + $0x68] sm:$0xff]  ;;  %v2723_v9 = vld [vmem:[#allocation10 + $0x60] sm:$0xff] }
 0x29a   : > { %3266 = vmatprep.subr.mxu1 %v2216_v7  ;;  %v2807_v7 = vld [vmem:[#allocation11 + $0x48] sm:$0xff] }
 0x29b   : > { %3267 = vmatpush3.msra.mxu1 %v2200_v11  ;;  %v2806_v11 = vld [vmem:[#allocation11 + $0x40] sm:$0xff] }
 0x29c   : > { %3268 = vmatprep.subr.mxu1 %v2215_v12  ;;  %v2722_v12 = vld [vmem:[#allocation10 + $0x58] sm:$0xff] }
 0x29d   : > { %3269 = vmatpush3.msra.mxu1 %v2199_v13  ;;  %v2805_v13 = vld [vmem:[#allocation11 + $0x38] sm:$0xff] }
 0x29e   : > { %3270 = vmatprep.subr.mxu1 %v2214_v57  ;;  %v2721_v57 = vld [vmem:[#allocation10 + $0x50] sm:$0xff] }
 0x29f   : > { %3271 = vmatpush3.msra.mxu1 %v2198_v14  ;;  %v2804_v14 = vld [vmem:[#allocation11 + $0x30] sm:$0xff] }
 0x2a0   : > { %3272 = vmatprep.subr.mxu1 %v2213_v15  ;;  %v2720_v15 = vld [vmem:[#allocation10 + $0x48] sm:$0xff] }
 0x2a1   : > { %3273 = vmatpush3.msra.mxu1 %v2197_v16  ;;  %v2803_v16 = vld [vmem:[#allocation11 + $0x28] sm:$0xff] }
 0x2a2   : > { %3274 = vmatprep.subr.mxu1 %v2212_v55  ;;  %v2719_v55 = vld [vmem:[#allocation10 + $0x40] sm:$0xff] }
 0x2a3   : > { %3275 = vmatpush3.msra.mxu1 %v2196_v10  ;;  %v2802_v10 = vld [vmem:[#allocation11 + $0x20] sm:$0xff] }
 0x2a4   : > { %3276 = vmatprep.subr.mxu1 %v2211_v17  ;;  %v2718_v17 = vld [vmem:[#allocation10 + $0x38] sm:$0xff] }
 0x2a5   : > { %3277 = vmatpush3.msra.mxu1 %v2195_v18  ;;  %v2801_v18 = vld [vmem:[#allocation11 + $0x18] sm:$0xff] }
 0x2a6   : > { %3278 = vmatprep.subr.mxu1 %v2210_v19  ;;  %v2717_v19 = vld [vmem:[#allocation10 + $0x30] sm:$0xff] }
 0x2a7   : > { %3279 = vmatpush3.msra.mxu1 %v2194_v20  ;;  %v2800_v20 = vld [vmem:[#allocation11 + $0x10] sm:$0xff] }
 0x2a8   : > { %3280 = vmatprep.subr.mxu1 %v2209_v21  ;;  %v2716_v21 = vld [vmem:[#allocation10 + $0x28] sm:$0xff] }
 0x2a9   : > { %3281 = vmatpush3.msra.mxu1 %v2193_v22  ;;  %v2799_v22 = vld [vmem:[#allocation11 + $0x8] sm:$0xff] }
 0x2aa   : > { %3282 = vmatprep.subr.mxu1 %v2208_v23  ;;  %v2715_v23 = vld [vmem:[#allocation10 + $0x20] sm:$0xff] }
 0x2ab   : > { %3283 = vmatpush3.msra.mxu1 %v2192_v24  ;;  %v2798_v24 = vld [vmem:[#allocation11] sm:$0xff] }
 0x2ac   : > { %3284 = vmatprep.subr.mxu1 %v2207_v25  ;;  %v2714_v25 = vld [vmem:[#allocation10 + $0x18] sm:$0xff] }
 0x2ad   : > { %3285 = vmatpush3.msra.mxu1 %v2191_v26  ;;  %v2713_v26 = vld [vmem:[#allocation10 + $0x10] sm:$0xff] }
 0x2ae   : > { %3286 = vmatprep.subr.mxu1 %v2206_v27  ;;  %v2712_v27 = vld [vmem:[#allocation10 + $0x8] sm:$0xff] }
 0x2af   : > { %3287 = vmatpush3.msra.mxu1 %v2190_v29  ;;  %v2711_v29 = vld [vmem:[#allocation10] sm:$0xff] }
 0x2b0   : > { %3288 = vmatprep.subr.mxu1 %v2205_v31 }
 0x2b1   : > { %3289 = vmatpush3.msra.mxu1 %v2189_v32 }
 0x2b2   : > { %3290 = vmatprep.subr.mxu1 %v2204_v33 }
 0x2b3   : > { %3291 = vmatpush3.msra.mxu1 %v2188_v34 }
 0x2b4   : > { %3292 = vmatprep.subr.mxu1 %v2203_v35 }
 0x2b5   : > { %3293 = vmatpush3.msra.mxu1 %v2187_v36 }
 0x2b6   : > { %2291 = vmatmul.mubr.f32.vlgmr.msra.gmra.mxu1 %v4749_v30  ;;  %3571 = vmatprep.subr.mxu1 %v4050_v0  ;;  %v2553_v30 = vld [vmem:[%s4939_s6 + $0x40] sm:$0xff] }
 0x2b7   : > { %3572 = vmatpush3.msra.mxu1 %v2402_v37  ;;  %3579 = vmatprep.mubr.msk.f32.mxu1 %vm4051_vm0, %v4050_v0 }
 0x2b8   : > { %3573 = vmatprep.subr.mxu1 %v4050_v0 }
 0x2b9   : > { %3574 = vmatpush3.msra.mxu1 %v2401_v38 }
 0x2ba   : > { %3575 = vmatprep.subr.mxu1 %v4050_v0 }
 0x2bb   : > { %3576 = vmatpush3.msra.mxu1 %v2400_v39 }
 0x2bc   : > { %3577 = vmatprep.subr.mxu1 %v4050_v0 }
 0x2bd   : > { %3578 = vmatpush3.msra.mxu1 %v2399_v40 }
 0x2be   : > { %3580 = vmatmul.mubr.msk.f32.vlgmr.msra.gmra.mxu1 %vm1573_vm3, %v4774_v8  ;;  %3582 = vmatprep.subr.mxu1 %v4050_v0  ;;  %v2550_v8 = vld [vmem:[%s4939_s6 + $0x28] sm:$0xff] }
 0x2bf   : > { %3583 = vmatpush3.msra.mxu1 %v2553_v30  ;;  %3600 = vmatprep.mubr.msk.f32.mxu1 %vm4051_vm0, %v4050_v0 }
 0x2c0   : > { %3584 = vmatprep.subr.mxu1 %v4050_v0 }
 0x2c1   : > { %3585 = vmatpush3.msra.mxu1 %v2552_v41 }
 0x2c2   : > { %3586 = vmatprep.subr.mxu1 %v4050_v0 }
 0x2c3   : > { %3587 = vmatpush3.msra.mxu1 %v2551_v42 }
 0x2c4   : > { %3588 = vmatprep.subr.mxu1 %v4050_v0 }
 0x2c5   : > { %3589 = vmatpush3.msra.mxu1 %v2550_v8 }
 0x2c6   : > { %3590 = vmatprep.subr.mxu1 %v4050_v0 }
 0x2c7   : > { %3591 = vmatpush3.msra.mxu1 %v2549_v43  ;;  %v3334_v43 = vpop.f32.mrf.mxu0 }
 0x2c8   : > { %3592 = vmatprep.subr.mxu1 %v4050_v0 }
 0x2c9   : > { %3593 = vmatpush3.msra.mxu1 %v2548_v44 }
 0x2ca   : > { %3594 = vmatprep.subr.mxu1 %v4050_v0 }
 0x2cb   : > { %3595 = vmatpush3.msra.mxu1 %v2547_v45 }
 0x2cc   : > { %3596 = vmatprep.subr.mxu1 %v4050_v0 }
 0x2cd   : > { %3597 = vmatpush3.msra.mxu1 %v2546_v46 }
 0x2ce   : > { %3598 = vmatprep.subr.mxu1 %v4050_v0 }
 0x2cf   : > { %3599 = vmatpush3.msra.mxu1 %v2545_v47  ;;  %v3335_v47 = vpop.f32.mrf.mxu0 }
 0x2d0   : > { %3603 = vmatprep.subr.mxu1 %v4050_v0  ;;  %3601 = vmatmul.mubr.msk.f32.vlgmr.msra.gmra.mxu1 %vm579_vm1, %v3805_v49 }
 0x2d1   : > { %3604 = vmatpush3.msra.mxu1 %v2639_v48  ;;  %3621 = vmatprep.mubr.msk.f32.mxu1 %vm4051_vm0, %v4050_v0 }
 0x2d2   : > { %3605 = vmatprep.subr.mxu1 %v4050_v0 }
 0x2d3   : > { %3606 = vmatpush3.msra.mxu1 %v2638_v50  ;;  %v3336_v50 = vadd.f32 %v3335_v47, %v3334_v43 }
 0x2d4   : > { %3607 = vmatprep.subr.mxu1 %v4050_v0 }
 0x2d5   : > { %3608 = vmatpush3.msra.mxu1 %v2637_v51 }
 0x2d6   : > { %3609 = vmatprep.subr.mxu1 %v4050_v0 }
 0x2d7   : > { %3610 = vmatpush3.msra.mxu1 %v2636_v52 }
 0x2d8   : > { %3611 = vmatprep.subr.mxu1 %v4050_v0 }
 0x2d9   : > { %3612 = vmatpush3.msra.mxu1 %v2635_v53 }
 0x2da   : > { %3613 = vmatprep.subr.mxu1 %v4050_v0 }
 0x2db   : > { %3614 = vmatpush3.msra.mxu1 %v2634_v56 }
 0x2dc   : > { %3615 = vmatprep.subr.mxu1 %v4050_v0 }
 0x2dd   : > { %3616 = vmatpush3.msra.mxu1 %v2633_v59 }
 0x2de   : > { %3617 = vmatprep.subr.mxu1 %v4050_v0 }
 0x2df   : > { %3618 = vmatpush3.msra.mxu1 %v2632_v60 }
 0x2e0   : > { %3619 = vmatprep.subr.mxu1 %v4050_v0 }
 0x2e1   : > { %3620 = vmatpush3.msra.mxu1 %v2631_v61 }
 0x2e2   : > { %3622 = vmatmul.mubr.msk.f32.vlgmr.msra.gmra.mxu1 %vm579_vm1, %v4577_v54  ;;  %3659 = vmatprep.subr.mxu1 %v4050_v0  ;;  %v2726_v54 = vld [vmem:[#allocation10 + $0x78] sm:$0xff] }
 0x2e3   : > { %3691 = vmatprep.mubr.msk.f32.mxu1 %vm4051_vm0, %v4050_v0  ;;  %3660 = vmatpush3.msra.mxu1 %v2813_v62 }
 0x2e4   : > { %3661 = vmatprep.subr.mxu1 %v4050_v0  ;;  %3625 = vmatpush3.msra.mxu0 %v2726_v54 }
 0x2e5   : > { %3662 = vmatpush3.msra.mxu1 %v2812_v63  ;;  %3626 = vmatprep.subr.mxu0 %v4050_v0 }
 0x2e6   : > { %3663 = vmatprep.subr.mxu1 %v4050_v0  ;;  %3627 = vmatpush3.msra.mxu0 %v2725_v3 }
 0x2e7   : > { %3664 = vmatpush3.msra.mxu1 %v2811_v28  ;;  %3628 = vmatprep.subr.mxu0 %v4050_v0 }
 0x2e8   : > { %3665 = vmatprep.subr.mxu1 %v4050_v0  ;;  %3629 = vmatpush3.msra.mxu0 %v2724_v6 }
 0x2e9   : > { %3666 = vmatpush3.msra.mxu1 %v2810_v1  ;;  %3630 = vmatprep.subr.mxu0 %v4050_v0  ;;  %v4052_v1 = vmov -1.0  }
 0x2ea   : > { %3667 = vmatprep.subr.mxu1 %v4050_v0  ;;  %3631 = vmatpush3.msra.mxu0 %v2723_v9 }
 0x2eb   : > { %3668 = vmatpush3.msra.mxu1 %v2809_v2  ;;  %3632 = vmatprep.subr.mxu0 %v4050_v0 }
 0x2ec   : > { %3669 = vmatprep.subr.mxu1 %v4050_v0  ;;  %3633 = vmatpush3.msra.mxu0 %v2722_v12 }
 0x2ed   : > { %3670 = vmatpush3.msra.mxu1 %v2808_v4  ;;  %3634 = vmatprep.subr.mxu0 %v4050_v0 }
 0x2ee   : > { %3671 = vmatprep.subr.mxu1 %v4050_v0  ;;  %3635 = vmatpush3.msra.mxu0 %v2721_v57 }
 0x2ef   : > { %3672 = vmatpush3.msra.mxu1 %v2807_v7  ;;  %3636 = vmatprep.subr.mxu0 %v4050_v0 }
 0x2f0   : > { %3673 = vmatprep.subr.mxu1 %v4050_v0  ;;  %3637 = vmatpush3.msra.mxu0 %v2720_v15 }
 0x2f1   : > { %3674 = vmatpush3.msra.mxu1 %v2806_v11  ;;  %3638 = vmatprep.subr.mxu0 %v4050_v0 }
 0x2f2   : > { %3675 = vmatprep.subr.mxu1 %v4050_v0  ;;  %3639 = vmatpush3.msra.mxu0 %v2719_v55 }
 0x2f3   : > { %3676 = vmatpush3.msra.mxu1 %v2805_v13  ;;  %3640 = vmatprep.subr.mxu0 %v4050_v0 }
 0x2f4   : > { %3677 = vmatprep.subr.mxu1 %v4050_v0  ;;  %3641 = vmatpush3.msra.mxu0 %v2718_v17 }
 0x2f5   : > { %3678 = vmatpush3.msra.mxu1 %v2804_v14  ;;  %3642 = vmatprep.subr.mxu0 %v4050_v0 }
 0x2f6   : > { %3679 = vmatprep.subr.mxu1 %v4050_v0  ;;  %3643 = vmatpush3.msra.mxu0 %v2717_v19 }
 0x2f7   : > { %3680 = vmatpush3.msra.mxu1 %v2803_v16  ;;  %3644 = vmatprep.subr.mxu0 %v4050_v0 }
 0x2f8   : > { %3681 = vmatprep.subr.mxu1 %v4050_v0  ;;  %3645 = vmatpush3.msra.mxu0 %v2716_v21 }
 0x2f9   : > { %3682 = vmatpush3.msra.mxu1 %v2802_v10  ;;  %3646 = vmatprep.subr.mxu0 %v4050_v0 }
 0x2fa   : > { %3683 = vmatprep.subr.mxu1 %v4050_v0  ;;  %3647 = vmatpush3.msra.mxu0 %v2715_v23 }
 0x2fb   : > { %3684 = vmatpush3.msra.mxu1 %v2801_v18  ;;  %3648 = vmatprep.subr.mxu0 %v4050_v0 }
 0x2fc   : > { %3685 = vmatprep.subr.mxu1 %v4050_v0  ;;  %3649 = vmatpush3.msra.mxu0 %v2714_v25 }
 0x2fd   : > { %3686 = vmatpush3.msra.mxu1 %v2800_v20  ;;  %3650 = vmatprep.subr.mxu0 %v4050_v0 }
 0x2fe   : > { %3687 = vmatprep.subr.mxu1 %v4050_v0  ;;  %3651 = vmatpush3.msra.mxu0 %v2713_v26 }
 0x2ff   : > { %3688 = vmatpush3.msra.mxu1 %v2799_v22  ;;  %3652 = vmatprep.subr.mxu0 %v4050_v0 }
 0x300   : > { %3689 = vmatprep.subr.mxu1 %v4050_v0  ;;  %3653 = vmatpush3.msra.mxu0 %v2712_v27 }
 0x301   : > { %3690 = vmatpush3.msra.mxu1 %v2798_v24  ;;  %3654 = vmatprep.subr.mxu0 %v4050_v0 }
 0x302   : > { %3655 = vmatpush3.msra.mxu0 %v2711_v29 }
 0x356   : > { %v2152_v31 = vpop.f32.mrf.mxu1 }
 0x357   : > { %v2156_v32 = vadd.f32 %v2152_v31, %v4791_v58 }
 0x358   : > { %v3559_v33 = vpop.f32.mrf.mxu1 }
 0x359   : > { %v2159_v34 = vmul.f32 0.70710677, %v2156_v32  ;;  %v2157_v3 = vmul.f32 0.5, %v2156_v32 }
 0x35b   : > { %v2162_v35 = vand.u32 2147483647, %v2159_v34  ;;  %vm2160_vm5 = vcmp.ge.f32.partialorder %v2159_v34, 0.0 }
 0x35c   : > { %v2161_v54 = vsel %vm2160_vm5, 1.0, %v4052_v1 }
 0x35d   : > { %v2163_v36 = vmul.f32 0.3275911, %v2162_v35  ;;  %v2175_v38 = vsub.f32 0.0, %v2162_v35 }
 0x35f   : > { %v2164_v37 = vadd.f32 1.0, %v2163_v36  ;;  %v2176_v39 = vmul.f32 %v2175_v38, %v2162_v35 }
 0x361   : > { %3801 = vrcp.f32 %v2164_v37  ;;  %v2177_v41 = vmul.f32 1.442695, %v2176_v39 }
 0x363   : > { %3803 = vpow2.f32 %v2177_v41 }
 0x36e   : > { %v3802_v40 = vpop.eup %3801 }
 0x36f   : > { %v2166_v30 = vmul.f32 1.0614054, %v3802_v40 }
 0x370   : > { %v3804_v60 = vpop.eup %3803 }
 0x371   : > { %v2167_v42 = vadd.f32 -1.4531521, %v2166_v30 }
 0x373   : > { %v2168_v8 = vmul.f32 %v3802_v40, %v2167_v42 }
 0x375   : > { %v2169_v0 = vadd.f32 1.4214138, %v2168_v8 }
 0x376   : > { %v3294_v44 = vpop.f32.mrf.mxu1 }
 0x377   : > { %v2170_v45 = vmul.f32 %v3802_v40, %v2169_v0 }
 0x378   : > { %v3295_v46 = vpop.f32.mrf.mxu1 }
 0x379   : > { %v2171_v58 = vadd.f32 -0.28449672, %v2170_v45  ;;  %v3296_v49 = vadd.f32 %v3295_v46, %v3294_v44 }
 0x37b   : > { %v2172_v48 = vmul.f32 %v3802_v40, %v2171_v58  ;;  %v2363_v56 = vadd.f32 %v3296_v49, %v4796_v5  ;;  %v3072_v5 = vld [vmem:[%s4945_s12] ss:$0 sm:$0xff] }
 0x37d   : > { %v2173_v51 = vadd.f32 0.2548296, %v2172_v48 }
 0x37e   : > { %v2539_v52 = vpop.f32.mrf.mxu1 }
 0x37f   : > { %v2174_v53 = vmul.f32 %v3802_v40, %v2173_v51  ;;  %v2540_v59 = vadd.f32 %v3336_v50, %v2539_v52 }
 0x380   : > { %v3581_v61 = vpop.f32.mrf.mxu1 }
 0x381   : > { %v2179_v62 = vmul.f32 %v3804_v60, %v2174_v53  ;;  %v2543_v63 = vmax.f32 %v2363_v56, %v2540_v59 }
 0x383   : > { %v2180_v28 = vsub.f32 1.0, %v2179_v62  ;;  %3692 = vmatmul.mubr.f32.vlgmr.msra.gmra.mxu1 %v2543_v63 }
 0x385   : > { %v2181_v2 = vmul.f32 %v2180_v28, %v2161_v54 }
 0x387   : > { %v2182_v4 = vadd.f32 1.0, %v2181_v2 }
 0x389   : > { %v2183_v6 = vmul.f32 %v2182_v4, %v2157_v3 }
 0x38b   : > { %3657 = vmatmul.mubr.f32.vlgmr.msra.gmra.mxu0 %v2183_v6 }
 0x390   : > { %v2620_v7 = vpop.f32.mrf.mxu1 }
 0x391   : > { %v2630_v11 = vadd.f32 %v3072_v5, %v2620_v7 }
 0x392   : > { %v3602_v9 = vpop.f32.mrf.mxu1 }
 0x3a2   : > { %v2706_v12 = vpop.f32.mrf.mxu1 }
 0x3a3   : > { %v2710_v13 = vadd.f32 %v2706_v12, %v2630_v11 }
 0x3a4   : > { %v3623_v57 = vpop.f32.mrf.mxu1 }
 0x443   : > { %v2880_v14 = vpop.f32.mrf.mxu1 }
 0x445   : > { %v3693_v15 = vpop.f32.mrf.mxu1 }
 0x44b   : > { %v2793_v16 = vpop.f32.mrf.mxu0 }
 0x44c   : > { %v2797_v55 = vadd.f32 %v2793_v16, %v2710_v13 }
 0x44d   : > { %v3658_v10 = vpop.f32.mrf.mxu0 }
 0x44e   : > { %v2884_v17 = vadd.f32 %v2880_v14, %v2797_v55 }
 0x450   : > { %2885 = vst [vmem:[%s536_s30] sm:$0xff] %v2884_v17 }
 0x451   : > { %3975 = shalt.err (!%p3972_p0)
}
 0x452   : > { %s3976_s3 = scalar_lea.hbm %s2898_s17, 128  ;;  %s3980_s19 = scalar_lea.hbm %s4946_s13, 256 }
 0x453   : > { %p3977_p3 = scmp.ne.s32.totalorder %s2898_s17, %s3976_s3  ;;  %p3981_p1 = scmp.lt.s32.totalorder %s2898_s17, %s4946_s13 }
 0x454   : > { %p3982_p2 = scmp.lt.s32.totalorder %s3980_s19, %s3976_s3 }
 0x455   : > { %p3978_p12 = pnand %p3977_p3, %p4162_p5 }
 0x456   : > { %p3983_p4 = por %p3982_p2, %p3981_p1 }
 0x457   : > { %p3979_p10 = pneg %p3978_p12 }
 0x459   : > { %p3984_p9 = pnand %p3983_p4, %p3979_p10 }
 0x45b   : > { %3987 = shalt.err (!%p3984_p9)
}
 0x45c   : > { %3718 = dma.vmem_to_hbm [thread:$0]  (%p4162_p5), %s2901_s21, 128, %s2898_s17, %s2887_s20  }
 0x45d PF: > { %s5045_s16 = sld [smem:[#allocation19_spill]]  ;;  %p3755_p8 = scmp.ge.s32.totalorder %s4038_s28, 2 }
 0x45f   : > { %p3740_p13 = pnand %p3755_p8, %p4166_p6 }
 0x461   : > { %p3741_p7 = pneg %p3740_p13 }
 0x463   : > { %s2912_s23 = sand.u32 1, %s5045_s16  }
 0x464   : > { %s2913_s27 = scalar_lea.sflag [#allocation4], %s2912_s23 }
 0x465   : > { %4021 = dma.done.wait (%p3741_p7), %s2913_s27, 128  }
 0x466   : > { %4023 = vsyncadd (%p3741_p7), %s2913_s27, 4294967168  ;;  %s5047_s28 = sld [smem:[#allocation21_spill]]  ;;  %s5050_s25 = smov %s4030_s26 }
 0x467   : > { %s5048_s22 = sld [smem:[#allocation20_spill]] }
 0x468   : > { %s5049_s27 = sld [smem:[#allocation22_spill]] }
 0x46c   : > { %p27_p11 = scmp.ge.s32.totalorder %s5047_s28, 4  }
 0x46d   : > { %s5051_s26 = smov %s5048_s22 }
 0x46e   :  { %29 = sbr.rel (!%p27_p11) target bundleno = 9 (0x9), region = 140 }
 0x473   :  { %2918 = vsyncpa [#allocation3], 1 }
 0x474   :  { %2920 = vsyncpa [#allocation3 + $0x1], 1 }
 0x475   :  { %2921 = vsyncpa [#allocation6], 1 }
 0x476   :  { %2922 = vsyncpa [#allocation9], 1 }
 0x477   :  { %2923 = vsyncpa [#allocation12], 1 }
 0x478   :  { %2924 = vsyncpa [#allocation4], 1 }
 0x479   :  { %2926 = vsyncpa [#allocation4 + $0x1], 1 }

</bundles_post_ra>
